<compile_context>
chip_gen: v5e
topology: v5e:2x2
jax: 0.10.0
libtpu: 0.0.40
codegen_flags: <defaults>
</compile_context>

<pallas_src>
import functools

import jax
import jax.numpy as jnp
from jax import lax
from jax.experimental import pallas as pl
from jax.experimental.pallas import tpu as pltpu

LANE = 128


def _round_up(x, m):
    return ((x + m - 1) // m) * m


# ----------------------------------------------------------------------------
# Weight-slab layout (per branch): one (ROWS, 128) f32 array holding every
# pre-transposed weight band at an 8-aligned row offset.
# ----------------------------------------------------------------------------
def _band_offsets(hidden, heads, f_pad):
    offs, r = {}, 0
    for name, rows in (("pw", f_pad), ("g1w", hidden), ("gatw", hidden),
                       ("g2w", hidden), ("cw", 2 * hidden),
                       ("asrc", heads), ("adst", heads * hidden), ("bias", 5)):
        offs[name] = r
        r += _round_up(rows, 8)
    offs["total"] = _round_up(r, 8)
    return offs


def pack_weight_slab(params, args, f_pad):
    """Pack all (pre-transposed) branch weights into one (3, ROWS, 128) slab.

    Done once, outside the per-call path (weights are static)."""
    hd, heads = args["hidden_dim"], args["heads"]
    lanes = _round_up(max(LANE, hd, heads * hd, 2 * heads), LANE)
    offs = _band_offsets(hd, heads, f_pad)

    def put(slab, name, mat):
        r0 = offs[name]
        return slab.at[r0:r0 + mat.shape[0], 0:mat.shape[1]].set(mat)

    branch_slabs = []
    for prefix in ("het", "herb", "target"):
        slab = jnp.zeros((offs["total"], lanes), jnp.float32)
        slab = put(slab, "pw", params[f"{prefix}_proj_w"].T)     # (in_dim, H)
        slab = put(slab, "g1w", params[f"{prefix}_gcn1_w"].T)    # (H, H)
        slab = put(slab, "gatw", params[f"{prefix}_gat_w"].T)    # (H, heads*H)
        slab = put(slab, "g2w", params[f"{prefix}_gcn2_w"].T)    # (H, H)
        w = params[f"{prefix}_cnn_w"]                            # (H, 2, H, 1)
        cw_t = jnp.concatenate([w[:, 0, :, 0].T, w[:, 1, :, 0].T], axis=0)
        slab = put(slab, "cw", cw_t)                             # (2H, H)
        asrc = params[f"{prefix}_gat_asrc"]                      # (heads, H)
        adst = params[f"{prefix}_gat_adst"]
        asrc_mat = jnp.zeros((heads, heads * hd), jnp.float32)
        adst_mat = jnp.zeros((heads * hd, heads), jnp.float32)
        for h in range(heads):
            asrc_mat = asrc_mat.at[h, h * hd:(h + 1) * hd].set(asrc[h])
            adst_mat = adst_mat.at[h * hd:(h + 1) * hd, h].set(adst[h])
        slab = put(slab, "asrc", asrc_mat)                       # (heads, heads*H)
        slab = put(slab, "adst", adst_mat)                       # (heads*H, heads)
        bias = jnp.stack([params[f"{prefix}_proj_b"],
                          params[f"{prefix}_gcn1_b"],
                          params[f"{prefix}_gat_b"],
                          params[f"{prefix}_gcn2_b"],
                          params[f"{prefix}_cnn_b"]], axis=0)    # (5, H)
        slab = put(slab, "bias", bias)
        branch_slabs.append(slab)
    return jnp.stack(branch_slabs, axis=0), offs


# ----------------------------------------------------------------------------
# The single fused kernel: 3 branch pipelines + score epilogue, one invocation.
# ----------------------------------------------------------------------------
def _fused_kernel(x_ref, a_ref, w_ref, o_ref, *, heads, hidden, f_pad,
                  herb_n, target_n, offs):
    f32 = jnp.float32
    H = hidden

    def dot_t(a, b):  # a @ b.T (contract dim 1 of both), f32 accumulate
        return lax.dot_general(a, b, (((1,), (1,)), ((), ())),
                               preferred_element_type=f32)

    def band(b, name, rows, cols):
        r0 = offs[name]
        return w_ref[b, r0:r0 + rows, 0:cols]

    embs = []
    for b in range(3):                       # static unroll: het / herb / target
        x = x_ref[b]                         # (Np, Fp), zero-padded rows/cols
        a = a_ref[b]                         # (Np, Np) GCN-normalized adjacency
        mask = a > 0.0                       # == (adjacency + self loops) > 0

        pw = band(b, "pw", f_pad, H)
        g1w = band(b, "g1w", H, H)
        gatw = band(b, "gatw", H, heads * H)
        g2w = band(b, "g2w", H, H)
        cw = band(b, "cw", 2 * H, H)
        asrc = band(b, "asrc", heads, heads * H)    # block-diag rows
        adst = band(b, "adst", heads * H, heads)    # block-diag cols
        bias = band(b, "bias", 5, H)                # (5, H)
        pb, g1b, gatb, g2b, cb = (bias[k:k + 1, :] for k in range(5))

        # ---- projection ----
        proj = jnp.dot(x, pw, preferred_element_type=f32) + pb          # (Np, H)

        # ---- GCN 1 (+ residual + relu) ----
        gcn1 = jnp.dot(a, jnp.dot(proj, g1w, preferred_element_type=f32),
                       preferred_element_type=f32) + g1b + proj
        gcn1 = jnp.maximum(gcn1, 0.0)

        # ---- GAT (mean over heads, +bias, +residual, relu) ----
        xh_full = jnp.dot(gcn1, gatw, preferred_element_type=f32)       # (Np, heads*H)
        src_rows = dot_t(asrc, xh_full)                                 # (heads, Np)
        dst_cols = jnp.dot(xh_full, adst, preferred_element_type=f32)   # (Np, heads)
        acc = None
        for h in range(heads):                                          # static unroll
            xh = xh_full[:, h * H:(h + 1) * H]                          # (Np, H)
            e = dst_cols[:, h:h + 1] + src_rows[h:h + 1, :]             # (Np, Np)
            e = jnp.where(e > 0, e, 0.2 * e)                            # LeakyReLU(0.2)
            e = jnp.where(mask, e, -1e30)
            m = jnp.max(e, axis=1, keepdims=True)
            p = jnp.where(mask, jnp.exp(e - m), 0.0)
            inv = pl.reciprocal(jnp.sum(p, axis=1, keepdims=True))      # exact
            head_out = jnp.dot(p * inv, xh, preferred_element_type=f32)
            acc = head_out if acc is None else acc + head_out
        gat = jnp.maximum(acc * (1.0 / heads) + gatb + gcn1, 0.0)

        # ---- GCN 2 (+ residual + relu) ----
        gcn2 = jnp.dot(a, jnp.dot(gat, g2w, preferred_element_type=f32),
                       preferred_element_type=f32) + g2b + gat
        gcn2 = jnp.maximum(gcn2, 0.0)

        # ---- CNN epilogue: Conv2d(2,H,(H,1)) == [gcn1|gcn2] @ cw_t + b ----
        cat = jnp.concatenate([gcn1, gcn2], axis=1)                     # (Np, 2H)
        embs.append(jnp.dot(cat, cw, preferred_element_type=f32) + cb)  # (Np, H)

    # ---- fused score epilogue (dropout is identity at inference) ----
    het, herb, target = embs
    c = het[0:herb_n, :]
    d = het[herb_n:herb_n + target_n, :]
    o_ref[...] = (dot_t(c, d)
                  + dot_t(herb[0:herb_n, :], target[0:target_n, :]))    # (herb_n, target_n)


# ----------------------------------------------------------------------------
# Per-call graph glue + the single pallas_call.
# TODO(synk): duplicate edges / pre-existing self-loops collapse to weight 1
#             here (PyG scatter-add would count them); differs on multigraphs.
# ----------------------------------------------------------------------------
def gcn_norm_adj(edge_index, n_pad):
    # A[i, j] = 1 iff edge j -> i (PyG source_to_target). Self-loops are added
    # on every row (padded ones too) so mask == (a_norm > 0) holds in-kernel.
    a = jnp.zeros((n_pad, n_pad), jnp.float32)
    a = a.at[edge_index[1], edge_index[0]].set(1.0)
    a_hat = jnp.maximum(a, jnp.eye(n_pad, dtype=jnp.float32))
    dis = 1.0 / jnp.sqrt(jnp.maximum(a_hat.sum(axis=1), 1e-12))
    return dis[:, None] * a_hat * dis[None, :]


def pad2(a, rows, cols):
    out = jnp.zeros((rows, cols), jnp.float32)
    return out.at[:a.shape[0], :a.shape[1]].set(a)


def forward(w_slab, het_x, het_net, herb_net, herb_x, target_net, target_x,
            *, args, offs, n_pad, f_pad):
    heads, hidden = args["heads"], args["hidden_dim"]
    herb_n, target_n = args["herb_number"], args["target_number"]

    x_stack = jnp.stack([pad2(het_x, n_pad, f_pad),
                         pad2(herb_x, n_pad, f_pad),
                         pad2(target_x, n_pad, f_pad)], axis=0)
    a_stack = jnp.stack([gcn_norm_adj(het_net, n_pad),
                         gcn_norm_adj(herb_net, n_pad),
                         gcn_norm_adj(target_net, n_pad)], axis=0)

    kernel = functools.partial(_fused_kernel, heads=heads, hidden=hidden,
                               f_pad=f_pad, herb_n=herb_n, target_n=target_n,
                               offs=offs)
    return pl.pallas_call(
        kernel,
        out_shape=jax.ShapeDtypeStruct((herb_n, target_n), jnp.float32),
        grid=(1,),
        in_specs=[
            pl.BlockSpec((3, n_pad, f_pad), lambda i: (0, 0, 0)),   # x
            pl.BlockSpec((3, n_pad, n_pad), lambda i: (0, 0, 0)),   # a_norm
            pl.BlockSpec(w_slab.shape, lambda i: (0, 0, 0)),        # weight slab
        ],
        out_specs=pl.BlockSpec((herb_n, target_n), lambda i: (0, 0)),
        compiler_params=pltpu.CompilerParams(
            dimension_semantics=("arbitrary",)),
    )(x_stack, a_stack, w_slab)


# ----------------------------------------------------------------------------
# Deterministic parameter initialization (glorot weights, zero biases).
# ----------------------------------------------------------------------------
def glorot(key, shape):
    fan_in, fan_out = shape[-1], shape[0]
    limit = (6.0 / (fan_in + fan_out)) ** 0.5
    return jax.random.uniform(key, shape, jnp.float32, -limit, limit)


def init_params(key, args):
    hd, heads = args["hidden_dim"], args["heads"]
    in_dims = (("het", args["herb_number"] + args["target_number"]),
               ("herb", args["herb_number"]),
               ("target", args["target_number"]))
    p = {}
    for idx, (prefix, in_dim) in enumerate(in_dims):
        keys = jax.random.split(jax.random.fold_in(key, idx), 8)
        p[f"{prefix}_proj_w"] = glorot(keys[0], (hd, in_dim))
        p[f"{prefix}_proj_b"] = jnp.zeros((hd,), jnp.float32)
        p[f"{prefix}_gcn1_w"] = glorot(keys[1], (hd, hd))
        p[f"{prefix}_gcn1_b"] = jnp.zeros((hd,), jnp.float32)
        p[f"{prefix}_gat_w"] = glorot(keys[2], (heads * hd, hd))
        p[f"{prefix}_gat_asrc"] = glorot(keys[3], (heads, hd))
        p[f"{prefix}_gat_adst"] = glorot(keys[4], (heads, hd))
        p[f"{prefix}_gat_b"] = jnp.zeros((hd,), jnp.float32)
        p[f"{prefix}_gcn2_w"] = glorot(keys[5], (hd, hd))
        p[f"{prefix}_gcn2_b"] = jnp.zeros((hd,), jnp.float32)
        p[f"{prefix}_cnn_w"] = 0.1 * jax.random.normal(keys[6], (hd, 2, hd, 1), jnp.float32)
        p[f"{prefix}_cnn_b"] = jnp.zeros((hd,), jnp.float32)
    return p


def random_edge_index(key, n, num_edges):
    k1, k2 = jax.random.split(key)
    src = jax.random.randint(k1, (num_edges,), 0, n)
    dst = jax.random.randint(k2, (num_edges,), 0, n)
    # symmetrize (undirected graph)
    return jnp.stack([jnp.concatenate([src, dst]), jnp.concatenate([dst, src])])


if __name__ == "__main__":
    args = dict(herb_number=12, target_number=8, hidden_dim=32, heads=2, dropout=0.0)
    herb_n, target_n = args["herb_number"], args["target_number"]
    n_het = herb_n + target_n
    n_pad = _round_up(max(n_het, herb_n, target_n, 8), 8)
    f_pad = _round_up(max(n_het, herb_n, target_n, LANE), LANE)

    key = jax.random.PRNGKey(0)
    kp, kx1, kx2, kx3, ke1, ke2, ke3 = jax.random.split(key, 7)
    params = init_params(kp, args)

    het_x = jax.random.normal(kx1, (n_het, n_het), jnp.float32)
    herb_x = jax.random.normal(kx2, (herb_n, herb_n), jnp.float32)
    target_x = jax.random.normal(kx3, (target_n, target_n), jnp.float32)
    het_net = random_edge_index(ke1, n_het, 30)
    herb_net = random_edge_index(ke2, herb_n, 18)
    target_net = random_edge_index(ke3, target_n, 12)

    # Weight packing hoisted out of the per-call path (weights are static).
    w_slab, offs = pack_weight_slab(params, args, f_pad)
    w_slab = jax.block_until_ready(w_slab)

    fwd = jax.jit(functools.partial(forward, args=args, offs=offs,
                                    n_pad=n_pad, f_pad=f_pad))
    out = fwd(w_slab, het_x, het_net, herb_net, herb_x, target_net, target_x)
    out = jax.block_until_ready(out)
    assert out.shape == (herb_n, target_n)
    assert bool(jnp.all(jnp.isfinite(out)))
    print("KERNEL_OK")
</pallas_src>

<mosaic_0001>
module attributes {stable_mosaic.version = 11 : i64} {
  func.func @_fused_kernel(%arg0: i32, %arg1: memref<3x24x128xf32, #tpu.memory_space<vmem>>, %arg2: memref<3x24x24xf32, #tpu.memory_space<vmem>>, %arg3: memref<3x368x128xf32, #tpu.memory_space<vmem>>, %arg4: memref<12x8xf32, #tpu.memory_space<vmem>>) attributes {dimension_semantics = [#tpu.dimension_semantics<arbitrary>], iteration_bounds = array<i64: 1>, scalar_prefetch = 0 : i64, scratch_operands = 0 : i64, tpu.core_type = #tpu.core_type<tc>, window_params = [{pipeline_mode = #tpu.pipeline_mode<synchronous>, transform_indices = @transform_0, window_bounds = array<i64: 3, 24, 128>}, {pipeline_mode = #tpu.pipeline_mode<synchronous>, transform_indices = @transform_1, window_bounds = array<i64: 3, 24, 24>}, {pipeline_mode = #tpu.pipeline_mode<synchronous>, transform_indices = @transform_2, window_bounds = array<i64: 3, 368, 128>}, {pipeline_mode = #tpu.pipeline_mode<synchronous>, transform_indices = @transform_3, window_bounds = array<i64: 12, 8>}]} {
    %c0 = arith.constant 0 : index
    %c0_0 = arith.constant 0 : index
    %c0_1 = arith.constant 0 : index
    %0 = vector.load %arg1[%c0, %c0_0, %c0_1] : memref<3x24x128xf32, #tpu.memory_space<vmem>>, vector<1x24x128xf32>
    %1 = vector.shape_cast %0 : vector<1x24x128xf32> to vector<24x128xf32>
    %c0_2 = arith.constant 0 : index
    %c0_3 = arith.constant 0 : index
    %c0_4 = arith.constant 0 : index
    %2 = vector.load %arg2[%c0_2, %c0_3, %c0_4] : memref<3x24x24xf32, #tpu.memory_space<vmem>>, vector<1x24x24xf32>
    %3 = vector.shape_cast %2 : vector<1x24x24xf32> to vector<24x24xf32>
    %cst = arith.constant 0.000000e+00 : f32
    %4 = vector.broadcast %cst : f32 to vector<24x24xf32>
    %5 = arith.cmpf ogt, %3, %4 : vector<24x24xf32>
    %c0_5 = arith.constant 0 : index
    %c0_6 = arith.constant 0 : index
    %c0_7 = arith.constant 0 : index
    %6 = vector.load %arg3[%c0_5, %c0_6, %c0_7] : memref<3x368x128xf32, #tpu.memory_space<vmem>>, vector<1x128x32xf32>
    %7 = vector.shape_cast %6 : vector<1x128x32xf32> to vector<128x32xf32>
    %c0_8 = arith.constant 0 : index
    %c128 = arith.constant 128 : index
    %c0_9 = arith.constant 0 : index
    %8 = vector.load %arg3[%c0_8, %c128, %c0_9] : memref<3x368x128xf32, #tpu.memory_space<vmem>>, vector<1x32x32xf32>
    %9 = vector.shape_cast %8 : vector<1x32x32xf32> to vector<32x32xf32>
    %c0_10 = arith.constant 0 : index
    %c160 = arith.constant 160 : index
    %c0_11 = arith.constant 0 : index
    %10 = vector.load %arg3[%c0_10, %c160, %c0_11] : memref<3x368x128xf32, #tpu.memory_space<vmem>>, vector<1x32x64xf32>
    %11 = vector.shape_cast %10 : vector<1x32x64xf32> to vector<32x64xf32>
    %c0_12 = arith.constant 0 : index
    %c192 = arith.constant 192 : index
    %c0_13 = arith.constant 0 : index
    %12 = vector.load %arg3[%c0_12, %c192, %c0_13] : memref<3x368x128xf32, #tpu.memory_space<vmem>>, vector<1x32x32xf32>
    %13 = vector.shape_cast %12 : vector<1x32x32xf32> to vector<32x32xf32>
    %c0_14 = arith.constant 0 : index
    %c224 = arith.constant 224 : index
    %c0_15 = arith.constant 0 : index
    %14 = vector.load %arg3[%c0_14, %c224, %c0_15] : memref<3x368x128xf32, #tpu.memory_space<vmem>>, vector<1x64x32xf32>
    %15 = vector.shape_cast %14 : vector<1x64x32xf32> to vector<64x32xf32>
    %c0_16 = arith.constant 0 : index
    %c288 = arith.constant 288 : index
    %c0_17 = arith.constant 0 : index
    %16 = vector.load %arg3[%c0_16, %c288, %c0_17] : memref<3x368x128xf32, #tpu.memory_space<vmem>>, vector<1x2x64xf32>
    %17 = vector.shape_cast %16 : vector<1x2x64xf32> to vector<2x64xf32>
    %c0_18 = arith.constant 0 : index
    %c296 = arith.constant 296 : index
    %c0_19 = arith.constant 0 : index
    %18 = vector.load %arg3[%c0_18, %c296, %c0_19] : memref<3x368x128xf32, #tpu.memory_space<vmem>>, vector<1x64x2xf32>
    %19 = vector.shape_cast %18 : vector<1x64x2xf32> to vector<64x2xf32>
    %c0_20 = arith.constant 0 : index
    %c360 = arith.constant 360 : index
    %c0_21 = arith.constant 0 : index
    %20 = vector.load %arg3[%c0_20, %c360, %c0_21] : memref<3x368x128xf32, #tpu.memory_space<vmem>>, vector<1x5x32xf32>
    %21 = vector.shape_cast %20 : vector<1x5x32xf32> to vector<5x32xf32>
    %22 = vector.extract_strided_slice %21 {offsets = [0, 0], sizes = [1, 32], strides = [1, 1]} : vector<5x32xf32> to vector<1x32xf32>
    %23 = vector.extract_strided_slice %21 {offsets = [1, 0], sizes = [1, 32], strides = [1, 1]} : vector<5x32xf32> to vector<1x32xf32>
    %24 = vector.extract_strided_slice %21 {offsets = [2, 0], sizes = [1, 32], strides = [1, 1]} : vector<5x32xf32> to vector<1x32xf32>
    %25 = vector.extract_strided_slice %21 {offsets = [3, 0], sizes = [1, 32], strides = [1, 1]} : vector<5x32xf32> to vector<1x32xf32>
    %26 = vector.extract_strided_slice %21 {offsets = [4, 0], sizes = [1, 32], strides = [1, 1]} : vector<5x32xf32> to vector<1x32xf32>
    %cst_22 = arith.constant dense<0.000000e+00> : vector<24x32xf32>
    %27 = tpu.matmul %1, %7, %cst_22 {dimension_numbers = #tpu.dot_dimension_numbers<[1], [0], [0], [1], [0, 0, 1, 1], [], []>} : vector<24x128xf32>, vector<128x32xf32>, vector<24x32xf32> -> vector<24x32xf32>
    %28 = vector.broadcast %22 : vector<1x32xf32> to vector<24x32xf32>
    %29 = arith.addf %27, %28 : vector<24x32xf32>
    %cst_23 = arith.constant dense<0.000000e+00> : vector<24x32xf32>
    %30 = tpu.matmul %29, %9, %cst_23 {dimension_numbers = #tpu.dot_dimension_numbers<[1], [0], [0], [1], [0, 0, 1, 1], [], []>} : vector<24x32xf32>, vector<32x32xf32>, vector<24x32xf32> -> vector<24x32xf32>
    %cst_24 = arith.constant dense<0.000000e+00> : vector<24x32xf32>
    %31 = tpu.matmul %3, %30, %cst_24 {dimension_numbers = #tpu.dot_dimension_numbers<[1], [0], [0], [1], [0, 0, 1, 1], [], []>} : vector<24x24xf32>, vector<24x32xf32>, vector<24x32xf32> -> vector<24x32xf32>
    %32 = vector.broadcast %23 : vector<1x32xf32> to vector<24x32xf32>
    %33 = arith.addf %31, %32 : vector<24x32xf32>
    %34 = arith.addf %33, %29 : vector<24x32xf32>
    %cst_25 = arith.constant 0.000000e+00 : f32
    %35 = vector.broadcast %cst_25 : f32 to vector<24x32xf32>
    %36 = arith.maximumf %34, %35 : vector<24x32xf32>
    %cst_26 = arith.constant dense<0.000000e+00> : vector<24x64xf32>
    %37 = tpu.matmul %36, %11, %cst_26 {dimension_numbers = #tpu.dot_dimension_numbers<[1], [0], [0], [1], [0, 0, 1, 1], [], []>} : vector<24x32xf32>, vector<32x64xf32>, vector<24x64xf32> -> vector<24x64xf32>
    %cst_27 = arith.constant dense<0.000000e+00> : vector<2x24xf32>
    %38 = tpu.matmul %17, %37, %cst_27 {dimension_numbers = #tpu.dot_dimension_numbers<[1], [1], [0], [0], [0, 0, 1, 0], [], []>} : vector<2x64xf32>, vector<24x64xf32>, vector<2x24xf32> -> vector<2x24xf32>
    %cst_28 = arith.constant dense<0.000000e+00> : vector<24x2xf32>
    %39 = tpu.matmul %37, %19, %cst_28 {dimension_numbers = #tpu.dot_dimension_numbers<[1], [0], [0], [1], [0, 0, 1, 1], [], []>} : vector<24x64xf32>, vector<64x2xf32>, vector<24x2xf32> -> vector<24x2xf32>
    %40 = vector.extract_strided_slice %37 {offsets = [0, 0], sizes = [24, 32], strides = [1, 1]} : vector<24x64xf32> to vector<24x32xf32>
    %41 = vector.extract_strided_slice %39 {offsets = [0, 0], sizes = [24, 1], strides = [1, 1]} : vector<24x2xf32> to vector<24x1xf32>
    %42 = vector.extract_strided_slice %38 {offsets = [0, 0], sizes = [1, 24], strides = [1, 1]} : vector<2x24xf32> to vector<1x24xf32>
    %43 = vector.broadcast %41 : vector<24x1xf32> to vector<24x24xf32>
    %44 = vector.broadcast %42 : vector<1x24xf32> to vector<24x24xf32>
    %45 = arith.addf %43, %44 : vector<24x24xf32>
    %cst_29 = arith.constant 0.000000e+00 : f32
    %46 = vector.broadcast %cst_29 : f32 to vector<24x24xf32>
    %47 = arith.cmpf ogt, %45, %46 : vector<24x24xf32>
    %cst_30 = arith.constant 2.000000e-01 : f32
    %48 = vector.broadcast %cst_30 : f32 to vector<24x24xf32>
    %49 = arith.mulf %48, %45 : vector<24x24xf32>
    %50 = arith.select %47, %45, %49 : vector<24x24xi1>, vector<24x24xf32>
    %cst_31 = arith.constant -1.000000e+30 : f32
    %51 = vector.broadcast %cst_31 : f32 to vector<24x24xf32>
    %52 = arith.select %5, %50, %51 : vector<24x24xi1>, vector<24x24xf32>
    %cst_32 = arith.constant dense<0xFF800000> : vector<24xf32>
    %53 = vector.multi_reduction <maximumf>, %52, %cst_32 [1] : vector<24x24xf32> to vector<24xf32>
    %54 = vector.shape_cast %53 : vector<24xf32> to vector<24x1xf32>
    %55 = vector.broadcast %54 : vector<24x1xf32> to vector<24x24xf32>
    %56 = arith.subf %52, %55 : vector<24x24xf32>
    %57 = math.exp %56 : vector<24x24xf32>
    %cst_33 = arith.constant 0.000000e+00 : f32
    %58 = vector.broadcast %cst_33 : f32 to vector<24x24xf32>
    %59 = arith.select %5, %57, %58 : vector<24x24xi1>, vector<24x24xf32>
    %cst_34 = arith.constant dense<0.000000e+00> : vector<24xf32>
    %60 = vector.multi_reduction <add>, %59, %cst_34 [1] : vector<24x24xf32> to vector<24xf32>
    %61 = vector.shape_cast %60 : vector<24xf32> to vector<24x1xf32>
    %62 = tpu.reciprocal %61 : vector<24x1xf32> -> vector<24x1xf32>
    %63 = vector.broadcast %62 : vector<24x1xf32> to vector<24x24xf32>
    %64 = arith.mulf %59, %63 : vector<24x24xf32>
    %cst_35 = arith.constant dense<0.000000e+00> : vector<24x32xf32>
    %65 = tpu.matmul %64, %40, %cst_35 {dimension_numbers = #tpu.dot_dimension_numbers<[1], [0], [0], [1], [0, 0, 1, 1], [], []>} : vector<24x24xf32>, vector<24x32xf32>, vector<24x32xf32> -> vector<24x32xf32>
    %66 = vector.extract_strided_slice %37 {offsets = [0, 32], sizes = [24, 32], strides = [1, 1]} : vector<24x64xf32> to vector<24x32xf32>
    %67 = vector.extract_strided_slice %39 {offsets = [0, 1], sizes = [24, 1], strides = [1, 1]} : vector<24x2xf32> to vector<24x1xf32>
    %68 = vector.extract_strided_slice %38 {offsets = [1, 0], sizes = [1, 24], strides = [1, 1]} : vector<2x24xf32> to vector<1x24xf32>
    %69 = vector.broadcast %67 : vector<24x1xf32> to vector<24x24xf32>
    %70 = vector.broadcast %68 : vector<1x24xf32> to vector<24x24xf32>
    %71 = arith.addf %69, %70 : vector<24x24xf32>
    %cst_36 = arith.constant 0.000000e+00 : f32
    %72 = vector.broadcast %cst_36 : f32 to vector<24x24xf32>
    %73 = arith.cmpf ogt, %71, %72 : vector<24x24xf32>
    %cst_37 = arith.constant 2.000000e-01 : f32
    %74 = vector.broadcast %cst_37 : f32 to vector<24x24xf32>
    %75 = arith.mulf %74, %71 : vector<24x24xf32>
    %76 = arith.select %73, %71, %75 : vector<24x24xi1>, vector<24x24xf32>
    %cst_38 = arith.constant -1.000000e+30 : f32
    %77 = vector.broadcast %cst_38 : f32 to vector<24x24xf32>
    %78 = arith.select %5, %76, %77 : vector<24x24xi1>, vector<24x24xf32>
    %cst_39 = arith.constant dense<0xFF800000> : vector<24xf32>
    %79 = vector.multi_reduction <maximumf>, %78, %cst_39 [1] : vector<24x24xf32> to vector<24xf32>
    %80 = vector.shape_cast %79 : vector<24xf32> to vector<24x1xf32>
    %81 = vector.broadcast %80 : vector<24x1xf32> to vector<24x24xf32>
    %82 = arith.subf %78, %81 : vector<24x24xf32>
    %83 = math.exp %82 : vector<24x24xf32>
    %cst_40 = arith.constant 0.000000e+00 : f32
    %84 = vector.broadcast %cst_40 : f32 to vector<24x24xf32>
    %85 = arith.select %5, %83, %84 : vector<24x24xi1>, vector<24x24xf32>
    %cst_41 = arith.constant dense<0.000000e+00> : vector<24xf32>
    %86 = vector.multi_reduction <add>, %85, %cst_41 [1] : vector<24x24xf32> to vector<24xf32>
    %87 = vector.shape_cast %86 : vector<24xf32> to vector<24x1xf32>
    %88 = tpu.reciprocal %87 : vector<24x1xf32> -> vector<24x1xf32>
    %89 = vector.broadcast %88 : vector<24x1xf32> to vector<24x24xf32>
    %90 = arith.mulf %85, %89 : vector<24x24xf32>
    %cst_42 = arith.constant dense<0.000000e+00> : vector<24x32xf32>
    %91 = tpu.matmul %90, %66, %cst_42 {dimension_numbers = #tpu.dot_dimension_numbers<[1], [0], [0], [1], [0, 0, 1, 1], [], []>} : vector<24x24xf32>, vector<24x32xf32>, vector<24x32xf32> -> vector<24x32xf32>
    %92 = arith.addf %65, %91 : vector<24x32xf32>
    %cst_43 = arith.constant 5.000000e-01 : f32
    %93 = vector.broadcast %cst_43 : f32 to vector<24x32xf32>
    %94 = arith.mulf %92, %93 : vector<24x32xf32>
    %95 = vector.broadcast %24 : vector<1x32xf32> to vector<24x32xf32>
    %96 = arith.addf %94, %95 : vector<24x32xf32>
    %97 = arith.addf %96, %36 : vector<24x32xf32>
    %cst_44 = arith.constant 0.000000e+00 : f32
    %98 = vector.broadcast %cst_44 : f32 to vector<24x32xf32>
    %99 = arith.maximumf %97, %98 : vector<24x32xf32>
    %cst_45 = arith.constant dense<0.000000e+00> : vector<24x32xf32>
    %100 = tpu.matmul %99, %13, %cst_45 {dimension_numbers = #tpu.dot_dimension_numbers<[1], [0], [0], [1], [0, 0, 1, 1], [], []>} : vector<24x32xf32>, vector<32x32xf32>, vector<24x32xf32> -> vector<24x32xf32>
    %cst_46 = arith.constant dense<0.000000e+00> : vector<24x32xf32>
    %101 = tpu.matmul %3, %100, %cst_46 {dimension_numbers = #tpu.dot_dimension_numbers<[1], [0], [0], [1], [0, 0, 1, 1], [], []>} : vector<24x24xf32>, vector<24x32xf32>, vector<24x32xf32> -> vector<24x32xf32>
    %102 = vector.broadcast %25 : vector<1x32xf32> to vector<24x32xf32>
    %103 = arith.addf %101, %102 : vector<24x32xf32>
    %104 = arith.addf %103, %99 : vector<24x32xf32>
    %cst_47 = arith.constant 0.000000e+00 : f32
    %105 = vector.broadcast %cst_47 : f32 to vector<24x32xf32>
    %106 = arith.maximumf %104, %105 : vector<24x32xf32>
    %107 = tpu.concatenate %36, %106 in 1 : vector<24x32xf32>, vector<24x32xf32> -> vector<24x64xf32>
    %cst_48 = arith.constant dense<0.000000e+00> : vector<24x32xf32>
    %108 = tpu.matmul %107, %15, %cst_48 {dimension_numbers = #tpu.dot_dimension_numbers<[1], [0], [0], [1], [0, 0, 1, 1], [], []>} : vector<24x64xf32>, vector<64x32xf32>, vector<24x32xf32> -> vector<24x32xf32>
    %109 = vector.broadcast %26 : vector<1x32xf32> to vector<24x32xf32>
    %110 = arith.addf %108, %109 : vector<24x32xf32>
    %c1 = arith.constant 1 : index
    %c0_49 = arith.constant 0 : index
    %c0_50 = arith.constant 0 : index
    %111 = vector.load %arg1[%c1, %c0_49, %c0_50] : memref<3x24x128xf32, #tpu.memory_space<vmem>>, vector<1x24x128xf32>
    %112 = vector.shape_cast %111 : vector<1x24x128xf32> to vector<24x128xf32>
    %c1_51 = arith.constant 1 : index
    %c0_52 = arith.constant 0 : index
    %c0_53 = arith.constant 0 : index
    %113 = vector.load %arg2[%c1_51, %c0_52, %c0_53] : memref<3x24x24xf32, #tpu.memory_space<vmem>>, vector<1x24x24xf32>
    %114 = vector.shape_cast %113 : vector<1x24x24xf32> to vector<24x24xf32>
    %cst_54 = arith.constant 0.000000e+00 : f32
    %115 = vector.broadcast %cst_54 : f32 to vector<24x24xf32>
    %116 = arith.cmpf ogt, %114, %115 : vector<24x24xf32>
    %c1_55 = arith.constant 1 : index
    %c0_56 = arith.constant 0 : index
    %c0_57 = arith.constant 0 : index
    %117 = vector.load %arg3[%c1_55, %c0_56, %c0_57] : memref<3x368x128xf32, #tpu.memory_space<vmem>>, vector<1x128x32xf32>
    %118 = vector.shape_cast %117 : vector<1x128x32xf32> to vector<128x32xf32>
    %c1_58 = arith.constant 1 : index
    %c128_59 = arith.constant 128 : index
    %c0_60 = arith.constant 0 : index
    %119 = vector.load %arg3[%c1_58, %c128_59, %c0_60] : memref<3x368x128xf32, #tpu.memory_space<vmem>>, vector<1x32x32xf32>
    %120 = vector.shape_cast %119 : vector<1x32x32xf32> to vector<32x32xf32>
    %c1_61 = arith.constant 1 : index
    %c160_62 = arith.constant 160 : index
    %c0_63 = arith.constant 0 : index
    %121 = vector.load %arg3[%c1_61, %c160_62, %c0_63] : memref<3x368x128xf32, #tpu.memory_space<vmem>>, vector<1x32x64xf32>
    %122 = vector.shape_cast %121 : vector<1x32x64xf32> to vector<32x64xf32>
    %c1_64 = arith.constant 1 : index
    %c192_65 = arith.constant 192 : index
    %c0_66 = arith.constant 0 : index
    %123 = vector.load %arg3[%c1_64, %c192_65, %c0_66] : memref<3x368x128xf32, #tpu.memory_space<vmem>>, vector<1x32x32xf32>
    %124 = vector.shape_cast %123 : vector<1x32x32xf32> to vector<32x32xf32>
    %c1_67 = arith.constant 1 : index
    %c224_68 = arith.constant 224 : index
    %c0_69 = arith.constant 0 : index
    %125 = vector.load %arg3[%c1_67, %c224_68, %c0_69] : memref<3x368x128xf32, #tpu.memory_space<vmem>>, vector<1x64x32xf32>
    %126 = vector.shape_cast %125 : vector<1x64x32xf32> to vector<64x32xf32>
    %c1_70 = arith.constant 1 : index
    %c288_71 = arith.constant 288 : index
    %c0_72 = arith.constant 0 : index
    %127 = vector.load %arg3[%c1_70, %c288_71, %c0_72] : memref<3x368x128xf32, #tpu.memory_space<vmem>>, vector<1x2x64xf32>
    %128 = vector.shape_cast %127 : vector<1x2x64xf32> to vector<2x64xf32>
    %c1_73 = arith.constant 1 : index
    %c296_74 = arith.constant 296 : index
    %c0_75 = arith.constant 0 : index
    %129 = vector.load %arg3[%c1_73, %c296_74, %c0_75] : memref<3x368x128xf32, #tpu.memory_space<vmem>>, vector<1x64x2xf32>
    %130 = vector.shape_cast %129 : vector<1x64x2xf32> to vector<64x2xf32>
    %c1_76 = arith.constant 1 : index
    %c360_77 = arith.constant 360 : index
    %c0_78 = arith.constant 0 : index
    %131 = vector.load %arg3[%c1_76, %c360_77, %c0_78] : memref<3x368x128xf32, #tpu.memory_space<vmem>>, vector<1x5x32xf32>
    %132 = vector.shape_cast %131 : vector<1x5x32xf32> to vector<5x32xf32>
    %133 = vector.extract_strided_slice %132 {offsets = [0, 0], sizes = [1, 32], strides = [1, 1]} : vector<5x32xf32> to vector<1x32xf32>
    %134 = vector.extract_strided_slice %132 {offsets = [1, 0], sizes = [1, 32], strides = [1, 1]} : vector<5x32xf32> to vector<1x32xf32>
    %135 = vector.extract_strided_slice %132 {offsets = [2, 0], sizes = [1, 32], strides = [1, 1]} : vector<5x32xf32> to vector<1x32xf32>
    %136 = vector.extract_strided_slice %132 {offsets = [3, 0], sizes = [1, 32], strides = [1, 1]} : vector<5x32xf32> to vector<1x32xf32>
    %137 = vector.extract_strided_slice %132 {offsets = [4, 0], sizes = [1, 32], strides = [1, 1]} : vector<5x32xf32> to vector<1x32xf32>
    %cst_79 = arith.constant dense<0.000000e+00> : vector<24x32xf32>
    %138 = tpu.matmul %112, %118, %cst_79 {dimension_numbers = #tpu.dot_dimension_numbers<[1], [0], [0], [1], [0, 0, 1, 1], [], []>} : vector<24x128xf32>, vector<128x32xf32>, vector<24x32xf32> -> vector<24x32xf32>
    %139 = vector.broadcast %133 : vector<1x32xf32> to vector<24x32xf32>
    %140 = arith.addf %138, %139 : vector<24x32xf32>
    %cst_80 = arith.constant dense<0.000000e+00> : vector<24x32xf32>
    %141 = tpu.matmul %140, %120, %cst_80 {dimension_numbers = #tpu.dot_dimension_numbers<[1], [0], [0], [1], [0, 0, 1, 1], [], []>} : vector<24x32xf32>, vector<32x32xf32>, vector<24x32xf32> -> vector<24x32xf32>
    %cst_81 = arith.constant dense<0.000000e+00> : vector<24x32xf32>
    %142 = tpu.matmul %114, %141, %cst_81 {dimension_numbers = #tpu.dot_dimension_numbers<[1], [0], [0], [1], [0, 0, 1, 1], [], []>} : vector<24x24xf32>, vector<24x32xf32>, vector<24x32xf32> -> vector<24x32xf32>
    %143 = vector.broadcast %134 : vector<1x32xf32> to vector<24x32xf32>
    %144 = arith.addf %142, %143 : vector<24x32xf32>
    %145 = arith.addf %144, %140 : vector<24x32xf32>
    %cst_82 = arith.constant 0.000000e+00 : f32
    %146 = vector.broadcast %cst_82 : f32 to vector<24x32xf32>
    %147 = arith.maximumf %145, %146 : vector<24x32xf32>
    %cst_83 = arith.constant dense<0.000000e+00> : vector<24x64xf32>
    %148 = tpu.matmul %147, %122, %cst_83 {dimension_numbers = #tpu.dot_dimension_numbers<[1], [0], [0], [1], [0, 0, 1, 1], [], []>} : vector<24x32xf32>, vector<32x64xf32>, vector<24x64xf32> -> vector<24x64xf32>
    %cst_84 = arith.constant dense<0.000000e+00> : vector<2x24xf32>
    %149 = tpu.matmul %128, %148, %cst_84 {dimension_numbers = #tpu.dot_dimension_numbers<[1], [1], [0], [0], [0, 0, 1, 0], [], []>} : vector<2x64xf32>, vector<24x64xf32>, vector<2x24xf32> -> vector<2x24xf32>
    %cst_85 = arith.constant dense<0.000000e+00> : vector<24x2xf32>
    %150 = tpu.matmul %148, %130, %cst_85 {dimension_numbers = #tpu.dot_dimension_numbers<[1], [0], [0], [1], [0, 0, 1, 1], [], []>} : vector<24x64xf32>, vector<64x2xf32>, vector<24x2xf32> -> vector<24x2xf32>
    %151 = vector.extract_strided_slice %148 {offsets = [0, 0], sizes = [24, 32], strides = [1, 1]} : vector<24x64xf32> to vector<24x32xf32>
    %152 = vector.extract_strided_slice %150 {offsets = [0, 0], sizes = [24, 1], strides = [1, 1]} : vector<24x2xf32> to vector<24x1xf32>
    %153 = vector.extract_strided_slice %149 {offsets = [0, 0], sizes = [1, 24], strides = [1, 1]} : vector<2x24xf32> to vector<1x24xf32>
    %154 = vector.broadcast %152 : vector<24x1xf32> to vector<24x24xf32>
    %155 = vector.broadcast %153 : vector<1x24xf32> to vector<24x24xf32>
    %156 = arith.addf %154, %155 : vector<24x24xf32>
    %cst_86 = arith.constant 0.000000e+00 : f32
    %157 = vector.broadcast %cst_86 : f32 to vector<24x24xf32>
    %158 = arith.cmpf ogt, %156, %157 : vector<24x24xf32>
    %cst_87 = arith.constant 2.000000e-01 : f32
    %159 = vector.broadcast %cst_87 : f32 to vector<24x24xf32>
    %160 = arith.mulf %159, %156 : vector<24x24xf32>
    %161 = arith.select %158, %156, %160 : vector<24x24xi1>, vector<24x24xf32>
    %cst_88 = arith.constant -1.000000e+30 : f32
    %162 = vector.broadcast %cst_88 : f32 to vector<24x24xf32>
    %163 = arith.select %116, %161, %162 : vector<24x24xi1>, vector<24x24xf32>
    %cst_89 = arith.constant dense<0xFF800000> : vector<24xf32>
    %164 = vector.multi_reduction <maximumf>, %163, %cst_89 [1] : vector<24x24xf32> to vector<24xf32>
    %165 = vector.shape_cast %164 : vector<24xf32> to vector<24x1xf32>
    %166 = vector.broadcast %165 : vector<24x1xf32> to vector<24x24xf32>
    %167 = arith.subf %163, %166 : vector<24x24xf32>
    %168 = math.exp %167 : vector<24x24xf32>
    %cst_90 = arith.constant 0.000000e+00 : f32
    %169 = vector.broadcast %cst_90 : f32 to vector<24x24xf32>
    %170 = arith.select %116, %168, %169 : vector<24x24xi1>, vector<24x24xf32>
    %cst_91 = arith.constant dense<0.000000e+00> : vector<24xf32>
    %171 = vector.multi_reduction <add>, %170, %cst_91 [1] : vector<24x24xf32> to vector<24xf32>
    %172 = vector.shape_cast %171 : vector<24xf32> to vector<24x1xf32>
    %173 = tpu.reciprocal %172 : vector<24x1xf32> -> vector<24x1xf32>
    %174 = vector.broadcast %173 : vector<24x1xf32> to vector<24x24xf32>
    %175 = arith.mulf %170, %174 : vector<24x24xf32>
    %cst_92 = arith.constant dense<0.000000e+00> : vector<24x32xf32>
    %176 = tpu.matmul %175, %151, %cst_92 {dimension_numbers = #tpu.dot_dimension_numbers<[1], [0], [0], [1], [0, 0, 1, 1], [], []>} : vector<24x24xf32>, vector<24x32xf32>, vector<24x32xf32> -> vector<24x32xf32>
    %177 = vector.extract_strided_slice %148 {offsets = [0, 32], sizes = [24, 32], strides = [1, 1]} : vector<24x64xf32> to vector<24x32xf32>
    %178 = vector.extract_strided_slice %150 {offsets = [0, 1], sizes = [24, 1], strides = [1, 1]} : vector<24x2xf32> to vector<24x1xf32>
    %179 = vector.extract_strided_slice %149 {offsets = [1, 0], sizes = [1, 24], strides = [1, 1]} : vector<2x24xf32> to vector<1x24xf32>
    %180 = vector.broadcast %178 : vector<24x1xf32> to vector<24x24xf32>
    %181 = vector.broadcast %179 : vector<1x24xf32> to vector<24x24xf32>
    %182 = arith.addf %180, %181 : vector<24x24xf32>
    %cst_93 = arith.constant 0.000000e+00 : f32
    %183 = vector.broadcast %cst_93 : f32 to vector<24x24xf32>
    %184 = arith.cmpf ogt, %182, %183 : vector<24x24xf32>
    %cst_94 = arith.constant 2.000000e-01 : f32
    %185 = vector.broadcast %cst_94 : f32 to vector<24x24xf32>
    %186 = arith.mulf %185, %182 : vector<24x24xf32>
    %187 = arith.select %184, %182, %186 : vector<24x24xi1>, vector<24x24xf32>
    %cst_95 = arith.constant -1.000000e+30 : f32
    %188 = vector.broadcast %cst_95 : f32 to vector<24x24xf32>
    %189 = arith.select %116, %187, %188 : vector<24x24xi1>, vector<24x24xf32>
    %cst_96 = arith.constant dense<0xFF800000> : vector<24xf32>
    %190 = vector.multi_reduction <maximumf>, %189, %cst_96 [1] : vector<24x24xf32> to vector<24xf32>
    %191 = vector.shape_cast %190 : vector<24xf32> to vector<24x1xf32>
    %192 = vector.broadcast %191 : vector<24x1xf32> to vector<24x24xf32>
    %193 = arith.subf %189, %192 : vector<24x24xf32>
    %194 = math.exp %193 : vector<24x24xf32>
    %cst_97 = arith.constant 0.000000e+00 : f32
    %195 = vector.broadcast %cst_97 : f32 to vector<24x24xf32>
    %196 = arith.select %116, %194, %195 : vector<24x24xi1>, vector<24x24xf32>
    %cst_98 = arith.constant dense<0.000000e+00> : vector<24xf32>
    %197 = vector.multi_reduction <add>, %196, %cst_98 [1] : vector<24x24xf32> to vector<24xf32>
    %198 = vector.shape_cast %197 : vector<24xf32> to vector<24x1xf32>
    %199 = tpu.reciprocal %198 : vector<24x1xf32> -> vector<24x1xf32>
    %200 = vector.broadcast %199 : vector<24x1xf32> to vector<24x24xf32>
    %201 = arith.mulf %196, %200 : vector<24x24xf32>
    %cst_99 = arith.constant dense<0.000000e+00> : vector<24x32xf32>
    %202 = tpu.matmul %201, %177, %cst_99 {dimension_numbers = #tpu.dot_dimension_numbers<[1], [0], [0], [1], [0, 0, 1, 1], [], []>} : vector<24x24xf32>, vector<24x32xf32>, vector<24x32xf32> -> vector<24x32xf32>
    %203 = arith.addf %176, %202 : vector<24x32xf32>
    %cst_100 = arith.constant 5.000000e-01 : f32
    %204 = vector.broadcast %cst_100 : f32 to vector<24x32xf32>
    %205 = arith.mulf %203, %204 : vector<24x32xf32>
    %206 = vector.broadcast %135 : vector<1x32xf32> to vector<24x32xf32>
    %207 = arith.addf %205, %206 : vector<24x32xf32>
    %208 = arith.addf %207, %147 : vector<24x32xf32>
    %cst_101 = arith.constant 0.000000e+00 : f32
    %209 = vector.broadcast %cst_101 : f32 to vector<24x32xf32>
    %210 = arith.maximumf %208, %209 : vector<24x32xf32>
    %cst_102 = arith.constant dense<0.000000e+00> : vector<24x32xf32>
    %211 = tpu.matmul %210, %124, %cst_102 {dimension_numbers = #tpu.dot_dimension_numbers<[1], [0], [0], [1], [0, 0, 1, 1], [], []>} : vector<24x32xf32>, vector<32x32xf32>, vector<24x32xf32> -> vector<24x32xf32>
    %cst_103 = arith.constant dense<0.000000e+00> : vector<24x32xf32>
    %212 = tpu.matmul %114, %211, %cst_103 {dimension_numbers = #tpu.dot_dimension_numbers<[1], [0], [0], [1], [0, 0, 1, 1], [], []>} : vector<24x24xf32>, vector<24x32xf32>, vector<24x32xf32> -> vector<24x32xf32>
    %213 = vector.broadcast %136 : vector<1x32xf32> to vector<24x32xf32>
    %214 = arith.addf %212, %213 : vector<24x32xf32>
    %215 = arith.addf %214, %210 : vector<24x32xf32>
    %cst_104 = arith.constant 0.000000e+00 : f32
    %216 = vector.broadcast %cst_104 : f32 to vector<24x32xf32>
    %217 = arith.maximumf %215, %216 : vector<24x32xf32>
    %218 = tpu.concatenate %147, %217 in 1 : vector<24x32xf32>, vector<24x32xf32> -> vector<24x64xf32>
    %cst_105 = arith.constant dense<0.000000e+00> : vector<24x32xf32>
    %219 = tpu.matmul %218, %126, %cst_105 {dimension_numbers = #tpu.dot_dimension_numbers<[1], [0], [0], [1], [0, 0, 1, 1], [], []>} : vector<24x64xf32>, vector<64x32xf32>, vector<24x32xf32> -> vector<24x32xf32>
    %220 = vector.broadcast %137 : vector<1x32xf32> to vector<24x32xf32>
    %221 = arith.addf %219, %220 : vector<24x32xf32>
    %c2 = arith.constant 2 : index
    %c0_106 = arith.constant 0 : index
    %c0_107 = arith.constant 0 : index
    %222 = vector.load %arg1[%c2, %c0_106, %c0_107] : memref<3x24x128xf32, #tpu.memory_space<vmem>>, vector<1x24x128xf32>
    %223 = vector.shape_cast %222 : vector<1x24x128xf32> to vector<24x128xf32>
    %c2_108 = arith.constant 2 : index
    %c0_109 = arith.constant 0 : index
    %c0_110 = arith.constant 0 : index
    %224 = vector.load %arg2[%c2_108, %c0_109, %c0_110] : memref<3x24x24xf32, #tpu.memory_space<vmem>>, vector<1x24x24xf32>
    %225 = vector.shape_cast %224 : vector<1x24x24xf32> to vector<24x24xf32>
    %cst_111 = arith.constant 0.000000e+00 : f32
    %226 = vector.broadcast %cst_111 : f32 to vector<24x24xf32>
    %227 = arith.cmpf ogt, %225, %226 : vector<24x24xf32>
    %c2_112 = arith.constant 2 : index
    %c0_113 = arith.constant 0 : index
    %c0_114 = arith.constant 0 : index
    %228 = vector.load %arg3[%c2_112, %c0_113, %c0_114] : memref<3x368x128xf32, #tpu.memory_space<vmem>>, vector<1x128x32xf32>
    %229 = vector.shape_cast %228 : vector<1x128x32xf32> to vector<128x32xf32>
    %c2_115 = arith.constant 2 : index
    %c128_116 = arith.constant 128 : index
    %c0_117 = arith.constant 0 : index
    %230 = vector.load %arg3[%c2_115, %c128_116, %c0_117] : memref<3x368x128xf32, #tpu.memory_space<vmem>>, vector<1x32x32xf32>
    %231 = vector.shape_cast %230 : vector<1x32x32xf32> to vector<32x32xf32>
    %c2_118 = arith.constant 2 : index
    %c160_119 = arith.constant 160 : index
    %c0_120 = arith.constant 0 : index
    %232 = vector.load %arg3[%c2_118, %c160_119, %c0_120] : memref<3x368x128xf32, #tpu.memory_space<vmem>>, vector<1x32x64xf32>
    %233 = vector.shape_cast %232 : vector<1x32x64xf32> to vector<32x64xf32>
    %c2_121 = arith.constant 2 : index
    %c192_122 = arith.constant 192 : index
    %c0_123 = arith.constant 0 : index
    %234 = vector.load %arg3[%c2_121, %c192_122, %c0_123] : memref<3x368x128xf32, #tpu.memory_space<vmem>>, vector<1x32x32xf32>
    %235 = vector.shape_cast %234 : vector<1x32x32xf32> to vector<32x32xf32>
    %c2_124 = arith.constant 2 : index
    %c224_125 = arith.constant 224 : index
    %c0_126 = arith.constant 0 : index
    %236 = vector.load %arg3[%c2_124, %c224_125, %c0_126] : memref<3x368x128xf32, #tpu.memory_space<vmem>>, vector<1x64x32xf32>
    %237 = vector.shape_cast %236 : vector<1x64x32xf32> to vector<64x32xf32>
    %c2_127 = arith.constant 2 : index
    %c288_128 = arith.constant 288 : index
    %c0_129 = arith.constant 0 : index
    %238 = vector.load %arg3[%c2_127, %c288_128, %c0_129] : memref<3x368x128xf32, #tpu.memory_space<vmem>>, vector<1x2x64xf32>
    %239 = vector.shape_cast %238 : vector<1x2x64xf32> to vector<2x64xf32>
    %c2_130 = arith.constant 2 : index
    %c296_131 = arith.constant 296 : index
    %c0_132 = arith.constant 0 : index
    %240 = vector.load %arg3[%c2_130, %c296_131, %c0_132] : memref<3x368x128xf32, #tpu.memory_space<vmem>>, vector<1x64x2xf32>
    %241 = vector.shape_cast %240 : vector<1x64x2xf32> to vector<64x2xf32>
    %c2_133 = arith.constant 2 : index
    %c360_134 = arith.constant 360 : index
    %c0_135 = arith.constant 0 : index
    %242 = vector.load %arg3[%c2_133, %c360_134, %c0_135] : memref<3x368x128xf32, #tpu.memory_space<vmem>>, vector<1x5x32xf32>
    %243 = vector.shape_cast %242 : vector<1x5x32xf32> to vector<5x32xf32>
    %244 = vector.extract_strided_slice %243 {offsets = [0, 0], sizes = [1, 32], strides = [1, 1]} : vector<5x32xf32> to vector<1x32xf32>
    %245 = vector.extract_strided_slice %243 {offsets = [1, 0], sizes = [1, 32], strides = [1, 1]} : vector<5x32xf32> to vector<1x32xf32>
    %246 = vector.extract_strided_slice %243 {offsets = [2, 0], sizes = [1, 32], strides = [1, 1]} : vector<5x32xf32> to vector<1x32xf32>
    %247 = vector.extract_strided_slice %243 {offsets = [3, 0], sizes = [1, 32], strides = [1, 1]} : vector<5x32xf32> to vector<1x32xf32>
    %248 = vector.extract_strided_slice %243 {offsets = [4, 0], sizes = [1, 32], strides = [1, 1]} : vector<5x32xf32> to vector<1x32xf32>
    %cst_136 = arith.constant dense<0.000000e+00> : vector<24x32xf32>
    %249 = tpu.matmul %223, %229, %cst_136 {dimension_numbers = #tpu.dot_dimension_numbers<[1], [0], [0], [1], [0, 0, 1, 1], [], []>} : vector<24x128xf32>, vector<128x32xf32>, vector<24x32xf32> -> vector<24x32xf32>
    %250 = vector.broadcast %244 : vector<1x32xf32> to vector<24x32xf32>
    %251 = arith.addf %249, %250 : vector<24x32xf32>
    %cst_137 = arith.constant dense<0.000000e+00> : vector<24x32xf32>
    %252 = tpu.matmul %251, %231, %cst_137 {dimension_numbers = #tpu.dot_dimension_numbers<[1], [0], [0], [1], [0, 0, 1, 1], [], []>} : vector<24x32xf32>, vector<32x32xf32>, vector<24x32xf32> -> vector<24x32xf32>
    %cst_138 = arith.constant dense<0.000000e+00> : vector<24x32xf32>
    %253 = tpu.matmul %225, %252, %cst_138 {dimension_numbers = #tpu.dot_dimension_numbers<[1], [0], [0], [1], [0, 0, 1, 1], [], []>} : vector<24x24xf32>, vector<24x32xf32>, vector<24x32xf32> -> vector<24x32xf32>
    %254 = vector.broadcast %245 : vector<1x32xf32> to vector<24x32xf32>
    %255 = arith.addf %253, %254 : vector<24x32xf32>
    %256 = arith.addf %255, %251 : vector<24x32xf32>
    %cst_139 = arith.constant 0.000000e+00 : f32
    %257 = vector.broadcast %cst_139 : f32 to vector<24x32xf32>
    %258 = arith.maximumf %256, %257 : vector<24x32xf32>
    %cst_140 = arith.constant dense<0.000000e+00> : vector<24x64xf32>
    %259 = tpu.matmul %258, %233, %cst_140 {dimension_numbers = #tpu.dot_dimension_numbers<[1], [0], [0], [1], [0, 0, 1, 1], [], []>} : vector<24x32xf32>, vector<32x64xf32>, vector<24x64xf32> -> vector<24x64xf32>
    %cst_141 = arith.constant dense<0.000000e+00> : vector<2x24xf32>
    %260 = tpu.matmul %239, %259, %cst_141 {dimension_numbers = #tpu.dot_dimension_numbers<[1], [1], [0], [0], [0, 0, 1, 0], [], []>} : vector<2x64xf32>, vector<24x64xf32>, vector<2x24xf32> -> vector<2x24xf32>
    %cst_142 = arith.constant dense<0.000000e+00> : vector<24x2xf32>
    %261 = tpu.matmul %259, %241, %cst_142 {dimension_numbers = #tpu.dot_dimension_numbers<[1], [0], [0], [1], [0, 0, 1, 1], [], []>} : vector<24x64xf32>, vector<64x2xf32>, vector<24x2xf32> -> vector<24x2xf32>
    %262 = vector.extract_strided_slice %259 {offsets = [0, 0], sizes = [24, 32], strides = [1, 1]} : vector<24x64xf32> to vector<24x32xf32>
    %263 = vector.extract_strided_slice %261 {offsets = [0, 0], sizes = [24, 1], strides = [1, 1]} : vector<24x2xf32> to vector<24x1xf32>
    %264 = vector.extract_strided_slice %260 {offsets = [0, 0], sizes = [1, 24], strides = [1, 1]} : vector<2x24xf32> to vector<1x24xf32>
    %265 = vector.broadcast %263 : vector<24x1xf32> to vector<24x24xf32>
    %266 = vector.broadcast %264 : vector<1x24xf32> to vector<24x24xf32>
    %267 = arith.addf %265, %266 : vector<24x24xf32>
    %cst_143 = arith.constant 0.000000e+00 : f32
    %268 = vector.broadcast %cst_143 : f32 to vector<24x24xf32>
    %269 = arith.cmpf ogt, %267, %268 : vector<24x24xf32>
    %cst_144 = arith.constant 2.000000e-01 : f32
    %270 = vector.broadcast %cst_144 : f32 to vector<24x24xf32>
    %271 = arith.mulf %270, %267 : vector<24x24xf32>
    %272 = arith.select %269, %267, %271 : vector<24x24xi1>, vector<24x24xf32>
    %cst_145 = arith.constant -1.000000e+30 : f32
    %273 = vector.broadcast %cst_145 : f32 to vector<24x24xf32>
    %274 = arith.select %227, %272, %273 : vector<24x24xi1>, vector<24x24xf32>
    %cst_146 = arith.constant dense<0xFF800000> : vector<24xf32>
    %275 = vector.multi_reduction <maximumf>, %274, %cst_146 [1] : vector<24x24xf32> to vector<24xf32>
    %276 = vector.shape_cast %275 : vector<24xf32> to vector<24x1xf32>
    %277 = vector.broadcast %276 : vector<24x1xf32> to vector<24x24xf32>
    %278 = arith.subf %274, %277 : vector<24x24xf32>
    %279 = math.exp %278 : vector<24x24xf32>
    %cst_147 = arith.constant 0.000000e+00 : f32
    %280 = vector.broadcast %cst_147 : f32 to vector<24x24xf32>
    %281 = arith.select %227, %279, %280 : vector<24x24xi1>, vector<24x24xf32>
    %cst_148 = arith.constant dense<0.000000e+00> : vector<24xf32>
    %282 = vector.multi_reduction <add>, %281, %cst_148 [1] : vector<24x24xf32> to vector<24xf32>
    %283 = vector.shape_cast %282 : vector<24xf32> to vector<24x1xf32>
    %284 = tpu.reciprocal %283 : vector<24x1xf32> -> vector<24x1xf32>
    %285 = vector.broadcast %284 : vector<24x1xf32> to vector<24x24xf32>
    %286 = arith.mulf %281, %285 : vector<24x24xf32>
    %cst_149 = arith.constant dense<0.000000e+00> : vector<24x32xf32>
    %287 = tpu.matmul %286, %262, %cst_149 {dimension_numbers = #tpu.dot_dimension_numbers<[1], [0], [0], [1], [0, 0, 1, 1], [], []>} : vector<24x24xf32>, vector<24x32xf32>, vector<24x32xf32> -> vector<24x32xf32>
    %288 = vector.extract_strided_slice %259 {offsets = [0, 32], sizes = [24, 32], strides = [1, 1]} : vector<24x64xf32> to vector<24x32xf32>
    %289 = vector.extract_strided_slice %261 {offsets = [0, 1], sizes = [24, 1], strides = [1, 1]} : vector<24x2xf32> to vector<24x1xf32>
    %290 = vector.extract_strided_slice %260 {offsets = [1, 0], sizes = [1, 24], strides = [1, 1]} : vector<2x24xf32> to vector<1x24xf32>
    %291 = vector.broadcast %289 : vector<24x1xf32> to vector<24x24xf32>
    %292 = vector.broadcast %290 : vector<1x24xf32> to vector<24x24xf32>
    %293 = arith.addf %291, %292 : vector<24x24xf32>
    %cst_150 = arith.constant 0.000000e+00 : f32
    %294 = vector.broadcast %cst_150 : f32 to vector<24x24xf32>
    %295 = arith.cmpf ogt, %293, %294 : vector<24x24xf32>
    %cst_151 = arith.constant 2.000000e-01 : f32
    %296 = vector.broadcast %cst_151 : f32 to vector<24x24xf32>
    %297 = arith.mulf %296, %293 : vector<24x24xf32>
    %298 = arith.select %295, %293, %297 : vector<24x24xi1>, vector<24x24xf32>
    %cst_152 = arith.constant -1.000000e+30 : f32
    %299 = vector.broadcast %cst_152 : f32 to vector<24x24xf32>
    %300 = arith.select %227, %298, %299 : vector<24x24xi1>, vector<24x24xf32>
    %cst_153 = arith.constant dense<0xFF800000> : vector<24xf32>
    %301 = vector.multi_reduction <maximumf>, %300, %cst_153 [1] : vector<24x24xf32> to vector<24xf32>
    %302 = vector.shape_cast %301 : vector<24xf32> to vector<24x1xf32>
    %303 = vector.broadcast %302 : vector<24x1xf32> to vector<24x24xf32>
    %304 = arith.subf %300, %303 : vector<24x24xf32>
    %305 = math.exp %304 : vector<24x24xf32>
    %cst_154 = arith.constant 0.000000e+00 : f32
    %306 = vector.broadcast %cst_154 : f32 to vector<24x24xf32>
    %307 = arith.select %227, %305, %306 : vector<24x24xi1>, vector<24x24xf32>
    %cst_155 = arith.constant dense<0.000000e+00> : vector<24xf32>
    %308 = vector.multi_reduction <add>, %307, %cst_155 [1] : vector<24x24xf32> to vector<24xf32>
    %309 = vector.shape_cast %308 : vector<24xf32> to vector<24x1xf32>
    %310 = tpu.reciprocal %309 : vector<24x1xf32> -> vector<24x1xf32>
    %311 = vector.broadcast %310 : vector<24x1xf32> to vector<24x24xf32>
    %312 = arith.mulf %307, %311 : vector<24x24xf32>
    %cst_156 = arith.constant dense<0.000000e+00> : vector<24x32xf32>
    %313 = tpu.matmul %312, %288, %cst_156 {dimension_numbers = #tpu.dot_dimension_numbers<[1], [0], [0], [1], [0, 0, 1, 1], [], []>} : vector<24x24xf32>, vector<24x32xf32>, vector<24x32xf32> -> vector<24x32xf32>
    %314 = arith.addf %287, %313 : vector<24x32xf32>
    %cst_157 = arith.constant 5.000000e-01 : f32
    %315 = vector.broadcast %cst_157 : f32 to vector<24x32xf32>
    %316 = arith.mulf %314, %315 : vector<24x32xf32>
    %317 = vector.broadcast %246 : vector<1x32xf32> to vector<24x32xf32>
    %318 = arith.addf %316, %317 : vector<24x32xf32>
    %319 = arith.addf %318, %258 : vector<24x32xf32>
    %cst_158 = arith.constant 0.000000e+00 : f32
    %320 = vector.broadcast %cst_158 : f32 to vector<24x32xf32>
    %321 = arith.maximumf %319, %320 : vector<24x32xf32>
    %cst_159 = arith.constant dense<0.000000e+00> : vector<24x32xf32>
    %322 = tpu.matmul %321, %235, %cst_159 {dimension_numbers = #tpu.dot_dimension_numbers<[1], [0], [0], [1], [0, 0, 1, 1], [], []>} : vector<24x32xf32>, vector<32x32xf32>, vector<24x32xf32> -> vector<24x32xf32>
    %cst_160 = arith.constant dense<0.000000e+00> : vector<24x32xf32>
    %323 = tpu.matmul %225, %322, %cst_160 {dimension_numbers = #tpu.dot_dimension_numbers<[1], [0], [0], [1], [0, 0, 1, 1], [], []>} : vector<24x24xf32>, vector<24x32xf32>, vector<24x32xf32> -> vector<24x32xf32>
    %324 = vector.broadcast %247 : vector<1x32xf32> to vector<24x32xf32>
    %325 = arith.addf %323, %324 : vector<24x32xf32>
    %326 = arith.addf %325, %321 : vector<24x32xf32>
    %cst_161 = arith.constant 0.000000e+00 : f32
    %327 = vector.broadcast %cst_161 : f32 to vector<24x32xf32>
    %328 = arith.maximumf %326, %327 : vector<24x32xf32>
    %329 = tpu.concatenate %258, %328 in 1 : vector<24x32xf32>, vector<24x32xf32> -> vector<24x64xf32>
    %cst_162 = arith.constant dense<0.000000e+00> : vector<24x32xf32>
    %330 = tpu.matmul %329, %237, %cst_162 {dimension_numbers = #tpu.dot_dimension_numbers<[1], [0], [0], [1], [0, 0, 1, 1], [], []>} : vector<24x64xf32>, vector<64x32xf32>, vector<24x32xf32> -> vector<24x32xf32>
    %331 = vector.broadcast %248 : vector<1x32xf32> to vector<24x32xf32>
    %332 = arith.addf %330, %331 : vector<24x32xf32>
    %333 = vector.extract_strided_slice %110 {offsets = [0, 0], sizes = [12, 32], strides = [1, 1]} : vector<24x32xf32> to vector<12x32xf32>
    %334 = vector.extract_strided_slice %110 {offsets = [12, 0], sizes = [8, 32], strides = [1, 1]} : vector<24x32xf32> to vector<8x32xf32>
    %cst_163 = arith.constant dense<0.000000e+00> : vector<12x8xf32>
    %335 = tpu.matmul %333, %334, %cst_163 {dimension_numbers = #tpu.dot_dimension_numbers<[1], [1], [0], [0], [0, 0, 1, 0], [], []>} : vector<12x32xf32>, vector<8x32xf32>, vector<12x8xf32> -> vector<12x8xf32>
    %336 = vector.extract_strided_slice %221 {offsets = [0, 0], sizes = [12, 32], strides = [1, 1]} : vector<24x32xf32> to vector<12x32xf32>
    %337 = vector.extract_strided_slice %332 {offsets = [0, 0], sizes = [8, 32], strides = [1, 1]} : vector<24x32xf32> to vector<8x32xf32>
    %cst_164 = arith.constant dense<0.000000e+00> : vector<12x8xf32>
    %338 = tpu.matmul %336, %337, %cst_164 {dimension_numbers = #tpu.dot_dimension_numbers<[1], [1], [0], [0], [0, 0, 1, 0], [], []>} : vector<12x32xf32>, vector<8x32xf32>, vector<12x8xf32> -> vector<12x8xf32>
    %339 = arith.addf %335, %338 : vector<12x8xf32>
    %c0_165 = arith.constant 0 : index
    %c0_166 = arith.constant 0 : index
    %340 = vector.load %arg4[%c0_165, %c0_166] : memref<12x8xf32, #tpu.memory_space<vmem>>, vector<12x8xf32>
    tpu.vector_store %arg4[%c0_165, %c0_166], %339 {strides = array<i32>} : memref<12x8xf32, #tpu.memory_space<vmem>>, vector<12x8xf32>,
    return
  }
  func.func @transform_0(%arg0: i32) -> (i32, i32, i32) {
    %c0_i32 = arith.constant 0 : i32
    %c0_i32_0 = arith.constant 0 : i32
    %c0_i32_1 = arith.constant 0 : i32
    %c0_i32_2 = arith.constant 0 : i32
    return %c0_i32, %c0_i32_0, %c0_i32_1 : i32, i32, i32
  }
  func.func @transform_1(%arg0: i32) -> (i32, i32, i32) {
    %c0_i32 = arith.constant 0 : i32
    %c0_i32_0 = arith.constant 0 : i32
    %c0_i32_1 = arith.constant 0 : i32
    %c0_i32_2 = arith.constant 0 : i32
    return %c0_i32, %c0_i32_0, %c0_i32_1 : i32, i32, i32
  }
  func.func @transform_2(%arg0: i32) -> (i32, i32, i32) {
    %c0_i32 = arith.constant 0 : i32
    %c0_i32_0 = arith.constant 0 : i32
    %c0_i32_1 = arith.constant 0 : i32
    %c0_i32_2 = arith.constant 0 : i32
    return %c0_i32, %c0_i32_0, %c0_i32_1 : i32, i32, i32
  }
  func.func @transform_3(%arg0: i32) -> (i32, i32) {
    %c0_i32 = arith.constant 0 : i32
    %c0_i32_0 = arith.constant 0 : i32
    %c0_i32_1 = arith.constant 0 : i32
    return %c0_i32, %c0_i32_0 : i32, i32
  }
}

</mosaic_0001>

<bundles_post_ra>
// kernel: forward.1
= control target key start
LH: loop header
LB: loop body
LE: loop exit
PB: predicated region body
PF: predicated region fallthrough
CT: control target
= control target key end

     0   :  { %vm96_vm0 = vcmask 261120   ;;  %vm133_vm1 = vcmask 195584   ;;  %vm210_vm2 = vcmask 523264   ;;  %v2421_v62 = vmov 0   ;;  %s2423_s11 = smov 96   ;;  %s2424_s22 = smov 32   ;;  %s3550_s2 = inlined_call_operand.vmem [shape: f32[3,368,128], index: 2, kind: input, shape index: {}]   ;;  %s3551_s0 = inlined_call_operand.vmem [shape: f32[3,24,128], index: 0, kind: input, shape index: {}]   ;;  %s3552_s1 = inlined_call_operand.vmem [shape: f32[3,24,24], index: 1, kind: input, shape index: {}]   ;;  %s3553_s3 = inlined_call_operand.vmem [shape: f32[12,8], index: 3, kind: output, shape index: {}]  }
   0x1   :  { %v38_v0 = vld [vmem:[%s3550_s2 + $0x78] sm:$0xff]  ;;  %v37_v1 = vld [vmem:[%s3550_s2 + $0x70] sm:$0xff]  ;;  %v36_v2 = vld [vmem:[%s3550_s2 + $0x68] sm:$0xff]  ;;  %2319 = vset.pattern.permute.xlu0 %v2421_v62  ;;  %2321 = vset.pattern.permute.xlu1 %v2421_v62 }
   0x2   :  { %70 = vmatpush.msra.mxu0 %v38_v0  ;;  %v35_v3 = vld [vmem:[%s3550_s2 + $0x60] sm:$0xff]  ;;  %v34_v4 = vld [vmem:[%s3550_s2 + $0x58] sm:$0xff]  ;;  %v33_v5 = vld [vmem:[%s3550_s2 + $0x50] sm:$0xff]  ;;  %2323 = vset.pattern.permute.xlu2 %v2421_v62 }
   0x3   :  { %v32_v6 = vld [vmem:[%s3550_s2 + $0x48] sm:$0xff]  ;;  %v31_v7 = vld [vmem:[%s3550_s2 + $0x40] sm:$0xff]  ;;  %v30_v8 = vld [vmem:[%s3550_s2 + $0x38] sm:$0xff] }
   0x4   :  { %71 = vmatpush.msra.mxu0 %v37_v1  ;;  %v29_v9 = vld [vmem:[%s3550_s2 + $0x30] sm:$0xff]  ;;  %v42_v10 = vld [vmem:[%s3550_s2 + $0x98] sm:$0xff]  ;;  %v28_v12 = vld [vmem:[%s3550_s2 + $0x28] sm:$0xff] }
   0x5   :  { %v41_v11 = vld [vmem:[%s3550_s2 + $0x90] sm:$0xff]  ;;  %118 = vmatpush.msra.mxu1 %v42_v10  ;;  %v27_v13 = vld [vmem:[%s3550_s2 + $0x20] sm:$0xff]  ;;  %v26_v14 = vld [vmem:[%s3550_s2 + $0x18] sm:$0xff] }
   0x6   :  { %72 = vmatpush.msra.mxu0 %v36_v2  ;;  %v25_v15 = vld [vmem:[%s3550_s2 + $0x10] sm:$0xff]  ;;  %v24_v16 = vld [vmem:[%s3550_s2 + $0x8] sm:$0xff]  ;;  %v23_v17 = vld [vmem:[%s3550_s2] sm:$0xff] }
   0x7   :  { %119 = vmatpush.msra.mxu1 %v41_v11  ;;  %v14_v18 = vld [vmem:[%s3551_s0] sm:$0xff]  ;;  %v15_v19 = vld [vmem:[%s3551_s0 + $0x8] sm:$0xff]  ;;  %v16_v20 = vld [vmem:[%s3551_s0 + $0x10] sm:$0xff] }
   0x8   :  { %73 = vmatpush.msra.mxu0 %v35_v3  ;;  %v40_v21 = vld [vmem:[%s3550_s2 + $0x88] sm:$0xff]  ;;  %v39_v22 = vld [vmem:[%s3550_s2 + $0x80] sm:$0xff]  ;;  %v2540_v36 = vld [vmem:[%s3552_s1 + $0x10] sm:$0xff] }
   0x9   :  { %120 = vmatpush.msra.mxu1 %v40_v21  ;;  %v2517_v23 = vld [vmem:[%s3550_s2 + $0x168] sm:$0x1f]  ;;  %v2526_v34 = vld [vmem:[%s3552_s1] sm:$0xff]  ;;  %v46_v37 = vld [vmem:[%s3550_s2 + $0xb8] sm:$0xff]  ;;  %vm22_vm6 = vcmp.gt.f32.partialorder %v2540_v36, 0.0 }
   0xa   :  { %74 = vmatpush.msra.mxu0 %v34_v4  ;;  %v69_v24 = vperm.slane %v2517_v23, 0  ;;  %v2533_v35 = vld [vmem:[%s3552_s1 + $0x8] sm:$0xff]  ;;  %196 = vmatpush.msra.mxu3 %v46_v37  ;;  %v45_v38 = vld [vmem:[%s3550_s2 + $0xb0] sm:$0xff]  ;;  %v43_v40 = vld [vmem:[%s3550_s2 + $0xa0] sm:$0xff]  ;;  %v132_v45 = vperm.slane %v2517_v23, 1  ;;  %vm20_vm3 = vcmp.gt.f32.partialorder %v2526_v34, 0.0 }
   0xb   :  { %121 = vmatpush.msra.mxu1 %v39_v22  ;;  %v44_v39 = vld [vmem:[%s3550_s2 + $0xa8] sm:$0xff]  ;;  %v67_v41 = vld [vmem:[%s3550_s2 + $0x160] sm:$0xff]  ;;  %v66_v42 = vld [vmem:[%s3550_s2 + $0x158] sm:$0xff]  ;;  %vm21_vm7 = vcmp.gt.f32.partialorder %v2533_v35, 0.0 }
   0xc   :  { %75 = vmatpush.msra.mxu0 %v33_v5  ;;  %197 = vmatpush.msra.mxu3 %v45_v38  ;;  %v65_v43 = vld [vmem:[%s3550_s2 + $0x150] sm:$0xff]  ;;  %v64_v44 = vld [vmem:[%s3550_s2 + $0x148] sm:$0xff]  ;;  %v63_v46 = vld [vmem:[%s3550_s2 + $0x140] sm:$0xff]  ;;  %v2422_v5 = vmov 1  }
   0xd   :  { %251 = vmatpush.msrb.mxu1 %v67_v41  ;;  %v62_v47 = vld [vmem:[%s3550_s2 + $0x138] sm:$0xff]  ;;  %v61_v50 = vld [vmem:[%s3550_s2 + $0x130] sm:$0xff]  ;;  %v60_v61 = vld [vmem:[%s3550_s2 + $0x128] sm:$0xff] }
   0xe   :  { %76 = vmatpush.msra.mxu0 %v32_v6  ;;  %198 = vmatpush.msra.mxu3 %v44_v39  ;;  %v59_v2 = vld [vmem:[%s3550_s2 + $0x120] sm:$0x3] }
   0xf   :  { %252 = vmatpush.msrb.mxu1 %v66_v42 }
  0x10   :  { %77 = vmatpush.msra.mxu0 %v31_v7  ;;  %199 = vmatpush.msra.mxu3 %v43_v40 }
  0x11   :  { %253 = vmatpush.msrb.mxu1 %v65_v43 }
  0x12   :  { %78 = vmatpush.msra.mxu0 %v30_v8 }
  0x13   :  { %254 = vmatpush.msrb.mxu1 %v64_v44 }
  0x14   :  { %79 = vmatpush.msra.mxu0 %v29_v9 }
  0x15   :  { %255 = vmatpush.msrb.mxu1 %v63_v46 }
  0x16   :  { %80 = vmatpush.msra.mxu0 %v28_v12 }
  0x17   :  { %256 = vmatpush.msrb.mxu1 %v62_v47 }
  0x18   :  { %81 = vmatpush.msra.mxu0 %v27_v13 }
  0x19   :  { %257 = vmatpush.msrb.mxu1 %v61_v50 }
  0x1a   :  { %82 = vmatpush.msra.mxu0 %v26_v14 }
  0x1b   :  { %258 = vmatpush.msrb.mxu1 %v60_v61 }
  0x1c   :  { %83 = vmatpush.msra.mxu0 %v25_v15 }
  0x1e   :  { %84 = vmatpush.msra.mxu0 %v24_v16 }
  0x20   :  { %85 = vmatpush.msra.mxu0 %v23_v17 }
  0x21   :  { %86 = vmatmul.f32.vlgmr.msra.gmra.mxu0 %v14_v18 }
  0x29   :  { %89 = vmatmul.f32.gmra.mxu0 %v15_v19 }
  0x31   :  { %92 = vmatmul.f32.gmra.mxu0 %v16_v20 }
  0x9e   :  { %v87_v25 = vpop.f32.mrf.mxu0 }
  0x9f   :  { %v88_v26 = vadd.f32 %v87_v25, %v69_v24 }
  0xa1   :  { %2112 = vmatmul.msk.f32.vlgmr.msra.gmra.mxu1 %vm96_vm0, %v88_v26 }
  0xa6   :  { %v90_v27 = vpop.f32.mrf.mxu0 }
  0xa7   :  { %v91_v28 = vadd.f32 %v90_v27, %v69_v24 }
  0xa9   :  { %2113 = vmatmul.msk.f32.gmra.mxu1 %vm96_vm0, %v91_v28 }
  0xae   :  { %v93_v29 = vpop.f32.mrf.mxu0 }
  0xaf   :  { %v94_v30 = vadd.f32 %v93_v29, %v69_v24 }
  0xb1   :  { %2114 = vmatmul.msk.f32.gmra.mxu1 %vm96_vm0, %v94_v30 }
 0x11e   :  { %v123_v31 = vpop.f32.mrf.mxu1 }
 0x126   :  { %v126_v32 = vpop.f32.mrf.mxu1 }
 0x12e   :  { %v129_v33 = vpop.f32.mrf.mxu1 }
 0x12f   :  { %156 = vmatpush.msra.mxu2 %v129_v33 }
 0x131   :  { %157 = vmatpush.msra.mxu2 %v126_v32 }
 0x133   :  { %158 = vmatpush.msra.mxu2 %v123_v31 }
 0x134   :  { %2115 = vmatmul.msk.f32.vlgmr.msra.gmra.mxu2 %vm133_vm1, %v2526_v34 }
 0x13c   :  { %2116 = vmatmul.msk.f32.gmra.mxu2 %vm133_vm1, %v2533_v35 }
 0x144   :  { %2117 = vmatmul.msk.f32.gmra.mxu2 %vm133_vm1, %v2540_v36 }
 0x1b7   :  { %v160_v48 = vpop.f32.mrf.mxu2 }
 0x1b8   :  { %v161_v49 = vadd.f32 %v160_v48, %v132_v45 }
 0x1ba   :  { %v169_v51 = vadd.f32 %v161_v49, %v88_v26 }
 0x1bc   :  { %v2578_v52 = vmax.f32 %v169_v51, 0.0 }
 0x1be   :  { %2118 = vmatmul.msk.f32.vlgmr.msra.gmra.mxu3 %vm96_vm0, %v2578_v52 }
 0x1bf   :  { %v163_v53 = vpop.f32.mrf.mxu2 }
 0x1c0   :  { %v164_v54 = vadd.f32 %v163_v53, %v132_v45 }
 0x1c2   :  { %v170_v55 = vadd.f32 %v164_v54, %v91_v28 }
 0x1c4   :  { %v2582_v56 = vmax.f32 %v170_v55, 0.0 }
 0x1c6   :  { %2119 = vmatmul.msk.f32.gmra.mxu3 %vm96_vm0, %v2582_v56 }
 0x1c7   :  { %v166_v57 = vpop.f32.mrf.mxu2 }
 0x1c8   :  { %v167_v58 = vadd.f32 %v166_v57, %v132_v45 }
 0x1ca   :  { %v171_v59 = vadd.f32 %v167_v58, %v94_v30 }
 0x1cc   :  { %v2586_v60 = vmax.f32 %v171_v59, 0.0 }
 0x1ce   :  { %2120 = vmatmul.msk.f32.gmra.mxu3 %vm96_vm0, %v2586_v60 }
 0x241   :  { %v2595_v63 = vpop.f32.mrf.mxu3 }
 0x242   :  { %2125 = vmatmul.msk.f32.vlgmr.msrb.gmra.mxu1 %vm210_vm2, %v2595_v63 }
 0x249   :  { %v2600_v0 = vpop.f32.mrf.mxu3 }
 0x24a   :  { %2126 = vmatmul.msk.f32.gmra.mxu1 %vm210_vm2, %v2600_v0 }
 0x251   :  { %v2604_v1 = vpop.f32.mrf.mxu3 }
 0x252   :  { %2121 = vmatpush.xpose.msk.msrb.mxu2 %vm210_vm2, %v2604_v1  ;;  %2127 = vmatmul.msk.f32.gmra.mxu1 %vm210_vm2, %v2604_v1 }
 0x256   :  { %2122 = vmatpush.xpose.msk.msrb.mxu2 %vm210_vm2, %v2600_v0 }
 0x25a   :  { %2123 = vmatpush.xpose.msk.msrb.mxu2 %vm210_vm2, %v2595_v63 }
 0x25d   :  { %2124 = vmatmul.msk.f32.vlgmr.msrb.gmra.mxu2 %vm210_vm2, %v59_v2 }
 0x25e   :  { %544 = vmatpush.msra.mxu2 %v2604_v1 }
 0x260   :  { %545 = vmatpush.msra.mxu2 %v2600_v0 }
 0x262   :  { %546 = vmatpush.msra.mxu2 %v2595_v63 }
 0x2bf   :  { %v260_v3 = vpop.f32.mrf.mxu1 }
 0x2c0   :  { %271 = vperm.xlu0 %2319, %v260_v3  }
 0x2c7   :  { %v263_v4 = vpop.f32.mrf.mxu1 }
 0x2c8   :  { %2320 = vset.pattern.permute.xlu0 %v2422_v5  ;;  %276 = vperm.xlu1 %2321, %v263_v4  }
 0x2c9   :  { %376 = vperm.xlu0 %2320, %v260_v3  }
 0x2cf   :  { %v266_v6 = vpop.f32.mrf.mxu1 }
 0x2d0   :  { %2322 = vset.pattern.permute.xlu1 %v2422_v5  ;;  %281 = vperm.xlu2 %2323, %v266_v6  }
 0x2d1   :  { %380 = vperm.xlu1 %2322, %v263_v4  }
 0x2d8   :  { %2324 = vset.pattern.permute.xlu2 %v2422_v5 }
 0x2d9   :  { %384 = vperm.xlu2 %2324, %v266_v6  }
 0x2e0   :  { %v240_v7 = vpop.f32.mrf.mxu2 }
 0x2e1   :  { %2330 = vset.pattern.permute.xlu2 %v2421_v62  ;;  %v284_v8 = vperm.slane %v240_v7, 0  ;;  %v387_v18 = vperm.slane %v240_v7, 1 }
 0x32a   :  { %v282_v9 = vpop.permute.xlu2 %281 }
 0x32b   :  { %v287_v11 = vadd.f32 %v284_v8, %v282_v9 }
 0x32d   :  { %v293_v14 = vmul.f32 0.2, %v287_v11  ;;  %vm290_vm5 = vcmp.gt.f32.partialorder %v287_v11, 0.0 }
 0x32f   :  { %v296_v22 = vsel %vm290_vm5, %v287_v11, %v293_v14 }
 0x330   :  { %v299_v27 = vsel %vm22_vm6, %v296_v22, -1e+30 }
 0x331   :  { %v306_v33 = vsel %vm133_vm1, %v299_v27, -inf }
 0x332   :  { %v272_v10 = vpop.permute.xlu0 %271 }
 0x333   :  { %v285_v12 = vadd.f32 %v284_v8, %v272_v10  ;;  %v385_v31 = vpop.permute.xlu2 %384 }
 0x334   :  { %v390_v40 = vadd.f32 %v387_v18, %v385_v31  ;;  %v2325_v31 = vpack.i.bf16 %v2600_v0, %v2604_v1  ;;  %v2163_v0 = vld [vmem:[%s3550_s2 + $0x1e0] sm:$0xff] }
 0x335   :  { %v291_v13 = vmul.f32 0.2, %v285_v12  ;;  %vm288_vm4 = vcmp.gt.f32.partialorder %v285_v12, 0.0 }
 0x336   :  { %v396_v43 = vmul.f32 0.2, %v390_v40  ;;  %vm393_vm11 = vcmp.gt.f32.partialorder %v390_v40, 0.0 }
 0x337   :  { %v294_v15 = vsel %vm288_vm4, %v285_v12, %v291_v13 }
 0x338   :  { %v297_v16 = vsel %vm20_vm3, %v294_v15, -1e+30  ;;  %v399_v47 = vsel %vm393_vm11, %v390_v40, %v396_v43  ;;  %v2162_v43 = vld [vmem:[%s3550_s2 + $0x1d8] sm:$0xff] }
 0x339   :  { %v300_v17 = vsel %vm133_vm1, %v297_v16, -inf  ;;  %v402_v48 = vsel %vm22_vm6, %v399_v47, -1e+30 }
 0x33a   :  { %v277_v19 = vpop.permute.xlu1 %276  ;;  %301 = vmax.xlane.f32.xlu1 %v300_v17  ;;  %v409_v49 = vsel %vm133_vm1, %v402_v48, -inf }
 0x33b   :  { %v286_v20 = vadd.f32 %v284_v8, %v277_v19  ;;  %v377_v21 = vpop.permute.xlu0 %376 }
 0x33c   :  { %v388_v24 = vadd.f32 %v387_v18, %v377_v21 }
 0x33d   :  { %v292_v25 = vmul.f32 0.2, %v286_v20  ;;  %vm289_vm8 = vcmp.gt.f32.partialorder %v286_v20, 0.0 }
 0x33e   :  { %v394_v26 = vmul.f32 0.2, %v388_v24  ;;  %vm391_vm9 = vcmp.gt.f32.partialorder %v388_v24, 0.0 }
 0x33f   :  { %v295_v28 = vsel %vm289_vm8, %v286_v20, %v292_v25 }
 0x340   :  { %v298_v29 = vsel %vm21_vm7, %v295_v28, -1e+30  ;;  %v397_v30 = vsel %vm391_vm9, %v388_v24, %v394_v26 }
 0x341   :  { %v303_v32 = vsel %vm133_vm1, %v298_v29, -inf  ;;  %v400_v37 = vsel %vm20_vm3, %v397_v30, -1e+30 }
 0x342   :  { %304 = vmax.xlane.f32.xlu0 %v303_v32  ;;  %307 = vmax.xlane.f32.xlu1 %v306_v33  ;;  %v403_v38 = vsel %vm133_vm1, %v400_v37, -inf }
 0x343   :  { %v381_v39 = vpop.permute.xlu1 %380  ;;  %404 = vmax.xlane.f32.xlu2 %v403_v38 }
 0x344   :  { %v389_v41 = vadd.f32 %v387_v18, %v381_v39 }
 0x346   :  { %v395_v42 = vmul.f32 0.2, %v389_v41  ;;  %vm392_vm10 = vcmp.gt.f32.partialorder %v389_v41, 0.0 }
 0x348   :  { %v398_v44 = vsel %vm392_vm10, %v389_v41, %v395_v42  ;;  %v2164_v41 = vld [vmem:[%s3550_s2 + $0x1e8] sm:$0xff] }
 0x349   :  { %v401_v45 = vsel %vm21_vm7, %v398_v44, -1e+30  ;;  %748 = vmatpush.msrb.mxu2 %v2164_v41  ;;  %v2153_v41 = vld [vmem:[%s3550_s2 + $0x190] sm:$0xff] }
 0x34a   :  { %v406_v46 = vsel %vm133_vm1, %v401_v45, -inf }
 0x34b   :  { %407 = vmax.xlane.f32.xlu2 %v406_v46  ;;  %749 = vmatpush.msrb.mxu2 %v2163_v0 }
 0x34d   :  { %750 = vmatpush.msrb.mxu2 %v2162_v43 }
 0x353   :  { %410 = vmax.xlane.f32.xlu2 %v409_v49 }
 0x3ad   :  { %v302_v50 = vpop.xlane.xlu1 %301 }
 0x3ae   :  { %v309_v51 = vsub.f32 %v297_v16, %v302_v50 }
 0x3b0   :  { %v312_v53 = vmul.f32 1.442695, %v309_v51 }
 0x3b2   :  { %2347 = vpow2.f32 %v312_v53 }
 0x3b5   :  { %v305_v54 = vpop.xlane.xlu0 %304  ;;  %v308_v55 = vpop.xlane.xlu1 %307 }
 0x3b6   :  { %v310_v57 = vsub.f32 %v298_v29, %v305_v54  ;;  %v311_v58 = vsub.f32 %v299_v27, %v308_v55  ;;  %v405_v59 = vpop.xlane.xlu2 %404 }
 0x3b7   :  { %v412_v61 = vsub.f32 %v400_v37, %v405_v59 }
 0x3b8   :  { %v2348_v2 = vpop.eup %2347  ;;  %v314_v3 = vmul.f32 1.442695, %v310_v57  ;;  %v316_v7 = vmul.f32 1.442695, %v311_v58  ;;  %v2160_v58 = vld [vmem:[%s3550_s2 + $0x1c8] sm:$0xff] }
 0x3b9   :  { %v415_v4 = vmul.f32 1.442695, %v412_v61  ;;  %v2648_v6 = vsel %vm20_vm3, %v2348_v2, 0.0  ;;  %v2159_v2 = vld [vmem:[%s3550_s2 + $0x1c0] sm:$0xff] }
 0x3ba   :  { %2349 = vpow2.f32 %v314_v3  ;;  %v321_v8 = vsel %vm133_vm1, %v2648_v6, 0.0 }
 0x3bb   :  { %322 = vadd.xlane.f32.xlu0 %v321_v8  ;;  %2351 = vpow2.f32 %v415_v4 }
 0x3bc   :  { %2353 = vpow2.f32 %v316_v7  ;;  %v2158_v7 = vld [vmem:[%s3550_s2 + $0x1b8] sm:$0xff] }
 0x3be   :  { %v408_v9 = vpop.xlane.xlu2 %407 }
 0x3bf   :  { %v413_v10 = vsub.f32 %v401_v45, %v408_v9  ;;  %v2161_v45 = vld [vmem:[%s3550_s2 + $0x1d0] sm:$0xff] }
 0x3c0   :  { %v2350_v11 = vpop.eup %2349  ;;  %751 = vmatpush.msrb.mxu2 %v2161_v45 }
 0x3c1   :  { %v417_v12 = vmul.f32 1.442695, %v413_v10  ;;  %v2654_v13 = vsel %vm21_vm7, %v2350_v11, 0.0  ;;  %v2352_v14 = vpop.eup %2351  ;;  %v2157_v11 = vld [vmem:[%s3550_s2 + $0x1b0] sm:$0xff] }
 0x3c2   :  { %v324_v15 = vsel %vm133_vm1, %v2654_v13, 0.0  ;;  %v2660_v16 = vsel %vm20_vm3, %v2352_v14, 0.0  ;;  %v2354_v17 = vpop.eup %2353  ;;  %752 = vmatpush.msrb.mxu2 %v2160_v58 }
 0x3c3   :  { %2355 = vpow2.f32 %v417_v12  ;;  %325 = vadd.xlane.f32.xlu2 %v324_v15  ;;  %v424_v18 = vsel %vm133_vm1, %v2660_v16, 0.0  ;;  %v2666_v21 = vsel %vm22_vm6, %v2354_v17, 0.0 }
 0x3c4   :  { %425 = vadd.xlane.f32.xlu1 %v424_v18  ;;  %v327_v25 = vsel %vm133_vm1, %v2666_v21, 0.0  ;;  %753 = vmatpush.msrb.mxu2 %v2159_v2 }
 0x3c6   :  { %v411_v19 = vpop.xlane.xlu2 %410  ;;  %754 = vmatpush.msrb.mxu2 %v2158_v7 }
 0x3c7   :  { %v414_v20 = vsub.f32 %v402_v48, %v411_v19 }
 0x3c8   :  { %755 = vmatpush.msrb.mxu2 %v2157_v11 }
 0x3c9   :  { %v2356_v22 = vpop.eup %2355  ;;  %v419_v24 = vmul.f32 1.442695, %v414_v20 }
 0x3ca   :  { %v2672_v26 = vsel %vm21_vm7, %v2356_v22, 0.0 }
 0x3cb   :  { %2357 = vpow2.f32 %v419_v24  ;;  %328 = vadd.xlane.f32.xlu2 %v327_v25  ;;  %v427_v27 = vsel %vm133_vm1, %v2672_v26, 0.0  ;;  %v2156_v24 = vld [vmem:[%s3550_s2 + $0x1a8] sm:$0xff] }
 0x3cc   :  { %428 = vadd.xlane.f32.xlu0 %v427_v27  ;;  %756 = vmatpush.msrb.mxu2 %v2156_v24  ;;  %v47_v24 = vld [vmem:[%s3550_s2 + $0xc0] sm:$0xff] }
 0x3d1   :  { %v2358_v28 = vpop.eup %2357 }
 0x3d2   :  { %v2678_v29 = vsel %vm22_vm6, %v2358_v28, 0.0  ;;  %v2155_v28 = vld [vmem:[%s3550_s2 + $0x1a0] sm:$0xff] }
 0x3d3   :  { %v430_v30 = vsel %vm133_vm1, %v2678_v29, 0.0  ;;  %757 = vmatpush.msrb.mxu2 %v2155_v28 }
 0x3d4   :  { %431 = vadd.xlane.f32.xlu0 %v430_v30 }
 0x3dd   :  { %2326 = vrot.lane.b32.xlu1 %v2325_v31, %s2423_s11 }
 0x3e3   :  { %478 = vrot.lane.b32.xlu2 %v2595_v63, %s2423_s11 }
 0x42e   :  { %v323_v32 = vpop.xlane.xlu0 %322 }
 0x42f   :  { %2359 = vrcp.f32 %v323_v32  ;;  %v341_v1 = vand.u32 2147483648, %v323_v32  ;;  %v339_v42 = vand.u32 2147483647, %v323_v32  ;;  %vm335_vm13 = vweird.f32 %v323_v32 }
 0x431   :  { %v342_v47 = vor.u32 1.1754944e-38, %v341_v1  ;;  %vm340_vm15 = vcmp.eq.f32.partialorder %v339_v42, 8.507059e+37 }
 0x435   :  { %v2360_v33 = vpop.eup %2359 }
 0x436   :  { %v331_v37 = vmul.f32 %v2360_v33, %v323_v32  ;;  %v326_v38 = vpop.xlane.xlu2 %325  ;;  %vm336_vm12 = vweird.f32 %v2360_v33  ;;  %v2154_v32 = vld [vmem:[%s3550_s2 + $0x198] sm:$0xff] }
 0x437   :  { %2361 = vrcp.f32 %v326_v38  ;;  %v2687_v40 = vpop.xlane.xlu1 %425  ;;  %vm337_vm14 = vmor %vm335_vm13, %vm336_vm12  ;;  %v355_v59 = vand.u32 2147483648, %v326_v38  ;;  %v353_v4 = vand.u32 2147483647, %v326_v38  ;;  %vm349_vm4 = vweird.f32 %v326_v38  ;;  %758 = vmatpush.msrb.mxu2 %v2154_v32 }
 0x438   :  { %v332_v39 = vsub.f32 1.0, %v331_v37  ;;  %2363 = vrcp.f32 %v2687_v40  ;;  %vm438_vm11 = vweird.f32 %v2687_v40  ;;  %v442_v1 = vand.u32 2147483647, %v2687_v40 }
 0x439   :  { %vm354_vm6 = vcmp.eq.f32.partialorder %v353_v4, 8.507059e+37  ;;  %759 = vmatpush.msrb.mxu2 %v2153_v41 }
 0x43a   :  { %v333_v63 = vmul.f32 %v2360_v33, %v332_v39 }
 0x43c   :  { %v334_v44 = vadd.f32 %v2360_v33, %v333_v63 }
 0x43d   :  { %v2362_v46 = vpop.eup %2361 }
 0x43e   :  { %v338_v48 = vsel %vm337_vm14, %v2360_v33, %v334_v44  ;;  %v345_v49 = vmul.f32 %v2362_v46, %v326_v38  ;;  %v2702_v50 = vpop.xlane.xlu2 %328  ;;  %v2704_v51 = vpop.eup %2363  ;;  %vm350_vm3 = vweird.f32 %v2362_v46  ;;  %v444_v38 = vand.u32 2147483648, %v2687_v40  ;;  %v2152_v44 = vld [vmem:[%s3550_s2 + $0x188] sm:$0xff] }
 0x43f   :  { %v343_v53 = vsel %vm340_vm15, %v342_v47, %v338_v48  ;;  %2365 = vrcp.f32 %v2702_v50  ;;  %v2707_v54 = vpop.xlane.xlu0 %428  ;;  %v434_v57 = vmul.f32 %v2704_v51, %v2687_v40  ;;  %vm351_vm5 = vmor %vm349_vm4, %vm350_vm3  ;;  %v369_v25 = vand.u32 2147483648, %v2702_v50  ;;  %760 = vmatpush.msrb.mxu2 %v2152_v44 }
 0x440   :  { %v346_v55 = vsub.f32 1.0, %v345_v49  ;;  %2367 = vrcp.f32 %v2707_v54  ;;  %v372_v61 = vmul.f32 %v343_v53, %v2648_v6  ;;  %v356_v6 = vor.u32 1.1754944e-38, %v355_v59  ;;  %v2151_v53 = vld [vmem:[%s3550_s2 + $0x180] sm:$0xff] }
 0x441   :  { %v435_v8 = vsub.f32 1.0, %v434_v57  ;;  %v367_v31 = vand.u32 2147483647, %v2702_v50  ;;  %vm363_vm8 = vweird.f32 %v2702_v50  ;;  %vm439_vm9 = vweird.f32 %v2704_v51  ;;  %761 = vmatpush.msrb.mxu2 %v2151_v53  ;;  %v2837_v53 = vld [vmem:[%s3550_s2 + $0x2d8] sm:$0x1f] }
 0x442   :  { %v347_v3 = vmul.f32 %v2362_v46, %v346_v55  ;;  %2131 = vmatmul.msk.f32.vlgmr.msra.gmra.mxu2 %vm133_vm1, %v372_v61  ;;  %v370_v39 = vor.u32 1.1754944e-38, %v369_v25  ;;  %vm2757_vm13 = vmor %vm438_vm11, %vm439_vm9  ;;  %v445_v49 = vor.u32 1.1754944e-38, %v444_v38  ;;  %vm443_vm14 = vcmp.eq.f32.partialorder %v442_v1, 8.507059e+37  ;;  %v2149_v61 = vld [vmem:[%s3550_s2 + $0x170] sm:$0xff]  ;;  %v2168_v25 = vld [vmem:[%s3550_s2 + $0x208] sm:$0xff] }
 0x443   :  { %v436_v19 = vmul.f32 %v2704_v51, %v435_v8  ;;  %vm368_vm12 = vcmp.eq.f32.partialorder %v367_v31, 8.507059e+37  ;;  %v458_v59 = vand.u32 2147483648, %v2707_v54  ;;  %vm452_vm3 = vweird.f32 %v2707_v54  ;;  %v2165_v31 = vld [vmem:[%s3550_s2 + $0x1f0] sm:$0xff] }
 0x444   :  { %v348_v9 = vadd.f32 %v2362_v46, %v347_v3  ;;  %v456_v4 = vand.u32 2147483647, %v2707_v54 }
 0x445   :  { %v2366_v10 = vpop.eup %2365  ;;  %v437_v33 = vadd.f32 %v2704_v51, %v436_v19 }
 0x446   :  { %v2726_v12 = vpop.eup %2367  ;;  %v359_v14 = vmul.f32 %v2366_v10, %v2702_v50  ;;  %v352_v15 = vsel %vm351_vm5, %v2362_v46, %v348_v9  ;;  %vm364_vm7 = vweird.f32 %v2366_v10  ;;  %v479_v2 = vpop.permute.xlu2 %478  ;;  %v2143_v9 = vld [vmem:[%s3551_s0 + $0x18] sm:$0xff]  ;;  %vm457_vm5 = vcmp.eq.f32.partialorder %v456_v4, 8.507059e+37 }
 0x447   :  { %v2729_v17 = vpop.xlane.xlu0 %431  ;;  %v357_v18 = vsel %vm354_vm6, %v356_v6, %v352_v15  ;;  %v448_v22 = vmul.f32 %v2726_v12, %v2707_v54  ;;  %vm365_vm10 = vmor %vm363_vm8, %vm364_vm7  ;;  %v441_v40 = vsel %vm2757_vm13, %v2704_v51, %v437_v33  ;;  %vm453_vm15 = vweird.f32 %v2726_v12  ;;  %v2144_v15 = vld [vmem:[%s3551_s0 + $0x20] sm:$0xff] }
 0x448   :  { %v360_v20 = vsub.f32 1.0, %v359_v14  ;;  %2369 = vrcp.f32 %v2729_v17  ;;  %v373_v27 = vmul.f32 %v357_v18, %v2654_v13  ;;  %v446_v57 = vsel %vm443_vm14, %v445_v49, %v441_v40  ;;  %vm454_vm4 = vmor %vm452_vm3, %vm453_vm15 }
 0x449   :  { %v449_v13 = vsub.f32 1.0, %v448_v22  ;;  %v475_v3 = vmul.f32 %v446_v57, %v2660_v16  ;;  %v472_v54 = vand.u32 2147483648, %v2729_v17  ;;  %vm466_vm7 = vweird.f32 %v2729_v17  ;;  %v49_v22 = vld [vmem:[%s3550_s2 + $0xd0] sm:$0xff] }
 0x44a   :  { %v361_v30 = vmul.f32 %v2366_v10, %v360_v20  ;;  %2132 = vmatmul.msk.f32.gmra.mxu2 %vm133_vm1, %v373_v27  ;;  %v470_v14 = vand.u32 2147483647, %v2729_v17  ;;  %v2167_v27 = vld [vmem:[%s3550_s2 + $0x200] sm:$0xff] }
 0x44b   :  { %v450_v45 = vmul.f32 %v2726_v12, %v449_v13  ;;  %v473_v18 = vor.u32 1.1754944e-38, %v472_v54  ;;  %v560_v13 = vperm.slane %v2517_v23, 2 }
 0x44c   :  { %v362_v37 = vadd.f32 %v2366_v10, %v361_v30  ;;  %vm471_vm9 = vcmp.eq.f32.partialorder %v470_v14, 8.507059e+37  ;;  %v2166_v30 = vld [vmem:[%s3550_s2 + $0x1f8] sm:$0xff] }
 0x44d   :  { %v451_v51 = vadd.f32 %v2726_v12, %v450_v45 }
 0x44e   :  { %v2370_v0 = vpop.eup %2369  ;;  %v366_v63 = vsel %vm365_vm10, %v2366_v10, %v362_v37  ;;  %v459_v10 = vor.u32 1.1754944e-38, %v458_v59 }
 0x44f   :  { %v371_v43 = vsel %vm368_vm12, %v370_v39, %v366_v63  ;;  %v462_v46 = vmul.f32 %v2370_v0, %v2729_v17  ;;  %v2327_v47 = vpop.permute.xlu1 %2326  ;;  %v455_v8 = vsel %vm454_vm4, %v2726_v12, %v451_v51  ;;  %vm467_vm6 = vweird.f32 %v2370_v0  ;;  %v50_v17 = vld [vmem:[%s3550_s2 + $0xd8] sm:$0xff] }
 0x450   :  { %v374_v48 = vmul.f32 %v371_v43, %v2666_v21  ;;  %v2328_v50 = vunpack.i.l.bf16 %v2327_v47  ;;  %v2329_v55 = vunpack.i.h.bf16 %v2327_v47  ;;  %v2150_v21 = vld [vmem:[%s3550_s2 + $0x178] sm:$0xff]  ;;  %v460_v6 = vsel %vm457_vm5, %v459_v10, %v455_v8  ;;  %vm468_vm8 = vmor %vm466_vm7, %vm467_vm6  ;;  %591 = vmatpush.msrb.mxu0 %v50_v17 }
 0x451   :  { %v463_v58 = vsub.f32 1.0, %v462_v46  ;;  %762 = vmatpush.msrb.mxu2 %v2150_v21  ;;  %v476_v11 = vmul.f32 %v460_v6, %v2672_v26  ;;  %v2145_v26 = vld [vmem:[%s3551_s0 + $0x28] sm:$0xff]  ;;  %v747_v21 = vperm.slane %v2837_v53, 0  ;;  %v2862_v6 = vld [vmem:[%s3552_s1 + $0x18] sm:$0xff] }
 0x452   :  { %509 = vmatpush.msrb.mxu3 %v2328_v50  ;;  %2133 = vmatmul.msk.f32.gmra.mxu2 %vm133_vm1, %v374_v48  ;;  %vm697_vm10 = vcmp.gt.f32.partialorder %v2862_v6, 0.0 }
 0x453   :  { %v464_v7 = vmul.f32 %v2370_v0, %v463_v58  ;;  %763 = vmatpush.msrb.mxu2 %v2149_v61  ;;  %592 = vmatpush.msrb.mxu0 %v49_v22 }
 0x454   :  { %510 = vmatpush.msrb.mxu3 %v2329_v55 }
 0x455   :  { %v465_v16 = vadd.f32 %v2370_v0, %v464_v7 }
 0x456   :  { %511 = vmatpush.msrb.mxu3 %v479_v2 }
 0x457   :  { %2128 = vmatmul.msk.f32.vlgmr.msrb.gmra.mxu3 %vm133_vm1, %v475_v3  ;;  %v469_v12 = vsel %vm468_vm8, %v2370_v0, %v465_v16 }
 0x458   :  { %v474_v19 = vsel %vm471_vm9, %v473_v18, %v469_v12 }
 0x459   :  { %v477_v20 = vmul.f32 %v474_v19, %v2678_v29  ;;  %v48_v29 = vld [vmem:[%s3550_s2 + $0xc8] sm:$0xff] }
 0x45a   :  { %764 = vmatmul.f32.vlgmr.msrb.gmra.mxu2 %v2143_v9  ;;  %593 = vmatpush.msrb.mxu0 %v48_v29  ;;  %v55_v29 = vld [vmem:[%s3550_s2 + $0x100] sm:$0xff] }
 0x45c   :  { %594 = vmatpush.msrb.mxu0 %v47_v24 }
 0x45e   :  { %795 = vmatpush.msra.mxu0 %v2168_v25  ;;  %v54_v25 = vld [vmem:[%s3550_s2 + $0xf8] sm:$0xff] }
 0x45f   :  { %2129 = vmatmul.msk.f32.gmra.mxu3 %vm133_vm1, %v476_v11 }
 0x460   :  { %796 = vmatpush.msra.mxu0 %v2167_v27 }
 0x462   :  { %767 = vmatmul.f32.gmra.mxu2 %v2144_v15  ;;  %797 = vmatpush.msra.mxu0 %v2166_v30  ;;  %v52_v30 = vld [vmem:[%s3550_s2 + $0xe8] sm:$0xff] }
 0x464   :  { %798 = vmatpush.msra.mxu0 %v2165_v31  ;;  %v51_v31 = vld [vmem:[%s3550_s2 + $0xe0] sm:$0xff] }
 0x467   :  { %2130 = vmatmul.msk.f32.gmra.mxu3 %vm133_vm1, %v477_v20  ;;  %v58_v20 = vld [vmem:[%s3550_s2 + $0x118] sm:$0xff] }
 0x468   :  { %671 = vmatpush.msra.mxu3 %v58_v20 }
 0x46a   :  { %770 = vmatmul.f32.gmra.mxu2 %v2145_v26  ;;  %v57_v26 = vld [vmem:[%s3550_s2 + $0x110] sm:$0xff] }
 0x46b   :  { %672 = vmatpush.msra.mxu3 %v57_v26 }
 0x4c5   :  { %v548_v28 = vpop.f32.mrf.mxu2 }
 0x4cd   :  { %v551_v39 = vpop.f32.mrf.mxu2 }
 0x4d5   :  { %v554_v45 = vpop.f32.mrf.mxu2 }
 0x4da   :  { %v513_v32 = vpop.f32.mrf.mxu3 }
 0x4db   :  { %v549_v33 = vadd.f32 %v548_v28, %v513_v32  ;;  %v53_v28 = vld [vmem:[%s3550_s2 + $0xf0] sm:$0xff]  ;;  %v2172_v32 = vld [vmem:[%s3550_s2 + $0x228] sm:$0xff] }
 0x4dd   :  { %v557_v37 = vmul.f32 0.5, %v549_v33  ;;  %v765_v55 = vpop.f32.mrf.mxu2  ;;  %v2171_v33 = vld [vmem:[%s3550_s2 + $0x220] sm:$0xff] }
 0x4de   :  { %v2841_v58 = vadd.f32 %v765_v55, %v747_v21  ;;  %v2193_v55 = vld [vmem:[%s3550_s2 + $0x2d0] sm:$0xff] }
 0x4df   :  { %v561_v38 = vadd.f32 %v560_v13, %v557_v37  ;;  %v2169_v37 = vld [vmem:[%s3550_s2 + $0x210] sm:$0xff] }
 0x4e1   :  { %v564_v41 = vadd.f32 %v561_v38, %v2578_v52 }
 0x4e2   :  { %v516_v0 = vpop.f32.mrf.mxu3 }
 0x4e3   :  { %v567_v1 = vmax.f32 %v564_v41, 0.0  ;;  %v552_v63 = vadd.f32 %v551_v39, %v516_v0 }
 0x4e5   :  { %v558_v42 = vmul.f32 0.5, %v552_v63  ;;  %2134 = vmatmul.msk.f32.vlgmr.msrb.gmra.mxu0 %vm96_vm0, %v567_v1  ;;  %v768_v51 = vpop.f32.mrf.mxu2  ;;  %v809_v63 = vperm.slane %v2837_v53, 1 }
 0x4e6   :  { %v2845_v59 = vadd.f32 %v768_v51, %v747_v21  ;;  %926 = vmatpush.msrb.mxu0 %v2193_v55  ;;  %v2189_v51 = vld [vmem:[%s3550_s2 + $0x2b0] sm:$0xff] }
 0x4e7   :  { %v562_v43 = vadd.f32 %v560_v13, %v558_v42 }
 0x4e9   :  { %v565_v44 = vadd.f32 %v562_v43, %v2582_v56 }
 0x4ea   :  { %v519_v46 = vpop.f32.mrf.mxu3 }
 0x4eb   :  { %v555_v47 = vadd.f32 %v554_v45, %v519_v46  ;;  %v568_v48 = vmax.f32 %v565_v44, 0.0 }
 0x4ed   :  { %v559_v40 = vmul.f32 0.5, %v555_v47  ;;  %2135 = vmatmul.msk.f32.gmra.mxu0 %vm96_vm0, %v568_v48  ;;  %v771_v61 = vpop.f32.mrf.mxu2 }
 0x4ee   :  { %v2849_v2 = vadd.f32 %v771_v61, %v747_v21  ;;  %v2191_v21 = vld [vmem:[%s3550_s2 + $0x2c0] sm:$0xff] }
 0x4ef   :  { %v563_v49 = vadd.f32 %v560_v13, %v559_v40  ;;  %v2170_v13 = vld [vmem:[%s3550_s2 + $0x218] sm:$0xff]  ;;  %v2187_v61 = vld [vmem:[%s3550_s2 + $0x2a0] sm:$0xff] }
 0x4f1   :  { %v566_v50 = vadd.f32 %v563_v49, %v2586_v60 }
 0x4f3   :  { %v569_v57 = vmax.f32 %v566_v50, 0.0 }
 0x4f5   :  { %2136 = vmatmul.msk.f32.gmra.mxu0 %vm96_vm0, %v569_v57 }
 0x4fd   :  { %2195 = vmatmul.msk.f32.vlgmr.msra.gmra.mxu0 %vm96_vm0, %v2841_v58 }
 0x505   :  { %2196 = vmatmul.msk.f32.gmra.mxu0 %vm96_vm0, %v2845_v59 }
 0x50d   :  { %2197 = vmatmul.msk.f32.gmra.mxu0 %vm96_vm0, %v2849_v2 }
 0x562   :  { %v596_v3 = vpop.f32.mrf.mxu0 }
 0x56a   :  { %v599_v4 = vpop.f32.mrf.mxu0 }
 0x572   :  { %v602_v7 = vpop.f32.mrf.mxu0 }
 0x573   :  { %619 = vmatpush.msra.mxu1 %v602_v7 }
 0x575   :  { %620 = vmatpush.msra.mxu1 %v599_v4 }
 0x577   :  { %621 = vmatpush.msra.mxu1 %v596_v3  ;;  %v2419_v3 = vld [vmem:[%s3550_s2 + $0x168] sm:$0x1f] }
 0x578   :  { %2137 = vmatmul.msk.f32.vlgmr.msra.gmra.mxu1 %vm133_vm1, %v2526_v34  ;;  %v2869_v34 = vld [vmem:[%s3552_s1 + $0x20] sm:$0xff]  ;;  %v2972_v4 = vperm.slane %v2419_v3, 4 }
 0x579   :  { %vm698_vm15 = vcmp.gt.f32.partialorder %v2869_v34, 0.0 }
 0x57a   :  { %v800_v8 = vpop.f32.mrf.mxu0 }
 0x580   :  { %2138 = vmatmul.msk.f32.gmra.mxu1 %vm133_vm1, %v2533_v35  ;;  %v2876_v35 = vld [vmem:[%s3552_s1 + $0x28] sm:$0xff] }
 0x581   :  { %vm699_vm12 = vcmp.gt.f32.partialorder %v2876_v35, 0.0 }
 0x582   :  { %v803_v9 = vpop.f32.mrf.mxu0 }
 0x588   :  { %2139 = vmatmul.msk.f32.gmra.mxu1 %vm133_vm1, %v2540_v36  ;;  %v605_v36 = vperm.slane %v2517_v23, 3  ;;  %v56_v23 = vld [vmem:[%s3550_s2 + $0x108] sm:$0xff] }
 0x589   :  { %673 = vmatpush.msra.mxu3 %v56_v23 }
 0x58a   :  { %v806_v10 = vpop.f32.mrf.mxu0 }
 0x58b   :  { %832 = vmatpush.msrb.mxu1 %v806_v10  ;;  %674 = vmatpush.msra.mxu3 %v55_v29 }
 0x58d   :  { %833 = vmatpush.msrb.mxu1 %v803_v9  ;;  %675 = vmatpush.msra.mxu3 %v54_v25 }
 0x58f   :  { %834 = vmatpush.msrb.mxu1 %v800_v8  ;;  %676 = vmatpush.msra.mxu3 %v53_v28 }
 0x590   :  { %2198 = vmatmul.msk.f32.vlgmr.msrb.gmra.mxu1 %vm133_vm1, %v2862_v6 }
 0x591   :  { %677 = vmatpush.msra.mxu3 %v52_v30 }
 0x593   :  { %678 = vmatpush.msra.mxu3 %v51_v31 }
 0x595   :  { %872 = vmatpush.msrb.mxu3 %v2172_v32 }
 0x597   :  { %873 = vmatpush.msrb.mxu3 %v2171_v33 }
 0x598   :  { %2199 = vmatmul.msk.f32.gmra.mxu1 %vm133_vm1, %v2869_v34 }
 0x599   :  { %874 = vmatpush.msrb.mxu3 %v2170_v13 }
 0x59b   :  { %875 = vmatpush.msrb.mxu3 %v2169_v37 }
 0x5a0   :  { %2200 = vmatmul.msk.f32.gmra.mxu1 %vm133_vm1, %v2876_v35 }
 0x5f5   :  { %v623_v16 = vpop.f32.mrf.mxu1 }
 0x5f6   :  { %v624_v54 = vadd.f32 %v623_v16, %v605_v36 }
 0x5f8   :  { %v632_v11 = vadd.f32 %v624_v54, %v567_v1 }
 0x5fa   :  { %v635_v14 = vmax.f32 %v632_v11, 0.0  ;;  %v2185_v11 = vld [vmem:[%s3550_s2 + $0x290] sm:$0x3] }
 0x5fc   :  { %641 = vrot.lane.b32.xlu0 %v635_v14, %s2424_s22 }
 0x5fd   :  { %v626_v12 = vpop.f32.mrf.mxu1 }
 0x5fe   :  { %v627_v15 = vadd.f32 %v626_v12, %v605_v36 }
 0x600   :  { %v633_v18 = vadd.f32 %v627_v15, %v568_v48 }
 0x602   :  { %v636_v19 = vmax.f32 %v633_v18, 0.0 }
 0x604   :  { %643 = vrot.lane.b32.xlu1 %v636_v19, %s2424_s22 }
 0x605   :  { %v629_v17 = vpop.f32.mrf.mxu1 }
 0x606   :  { %v630_v22 = vadd.f32 %v629_v17, %v605_v36 }
 0x608   :  { %v634_v24 = vadd.f32 %v630_v22, %v569_v57  ;;  %v2192_v57 = vld [vmem:[%s3550_s2 + $0x2c8] sm:$0xff] }
 0x609   :  { %927 = vmatpush.msrb.mxu0 %v2192_v57 }
 0x60a   :  { %v637_v27 = vmax.f32 %v634_v24, 0.0 }
 0x60b   :  { %928 = vmatpush.msrb.mxu0 %v2191_v21 }
 0x60c   :  { %645 = vrot.lane.b32.xlu1 %v637_v27, %s2424_s22 }
 0x60d   :  { %v836_v0 = vpop.f32.mrf.mxu1 }
 0x60e   :  { %v837_v42 = vadd.f32 %v836_v0, %v809_v63 }
 0x615   :  { %v839_v45 = vpop.f32.mrf.mxu1 }
 0x616   :  { %v840_v47 = vadd.f32 %v839_v45, %v809_v63 }
 0x61d   :  { %v842_v48 = vpop.f32.mrf.mxu1 }
 0x61e   :  { %v843_v49 = vadd.f32 %v842_v48, %v809_v63 }
 0x66e   :  { %v642_v38 = vpop.permute.xlu0 %641 }
 0x66f   :  { %v650_v39 = vsel %vm96_vm0, %v2578_v52, %v642_v38  ;;  %v845_v52 = vadd.f32 %v837_v42, %v2841_v58  ;;  %v2190_v58 = vld [vmem:[%s3550_s2 + $0x2b8] sm:$0xff] }
 0x670   :  { %2140 = vmatmul.msk.f32.vlgmr.msra.gmra.mxu3 %vm210_vm2, %v650_v39  ;;  %929 = vmatpush.msrb.mxu0 %v2190_v58 }
 0x671   :  { %v2931_v46 = vmax.f32 %v845_v52, 0.0 }
 0x672   :  { %930 = vmatpush.msrb.mxu0 %v2189_v51 }
 0x676   :  { %v644_v41 = vpop.permute.xlu1 %643 }
 0x677   :  { %v651_v1 = vsel %vm96_vm0, %v2582_v56, %v644_v41  ;;  %v846_v56 = vadd.f32 %v840_v47, %v2845_v59  ;;  %v2188_v59 = vld [vmem:[%s3550_s2 + $0x2a8] sm:$0xff] }
 0x678   :  { %2141 = vmatmul.msk.f32.gmra.mxu3 %vm210_vm2, %v651_v1  ;;  %931 = vmatpush.msrb.mxu0 %v2188_v59 }
 0x679   :  { %v2936_v40 = vmax.f32 %v846_v56, 0.0 }
 0x67a   :  { %932 = vmatpush.msrb.mxu0 %v2187_v61 }
 0x67e   :  { %v646_v43 = vpop.permute.xlu1 %645 }
 0x67f   :  { %v652_v44 = vsel %vm96_vm0, %v2586_v60, %v646_v43  ;;  %v847_v60 = vadd.f32 %v843_v49, %v2849_v2  ;;  %v2186_v2 = vld [vmem:[%s3550_s2 + $0x298] sm:$0xff] }
 0x680   :  { %2142 = vmatmul.msk.f32.gmra.mxu3 %vm210_vm2, %v652_v44  ;;  %933 = vmatpush.msrb.mxu0 %v2186_v2 }
 0x681   :  { %v2941_v50 = vmax.f32 %v847_v60, 0.0 }
 0x688   :  { %2201 = vmatmul.msk.f32.vlgmr.msrb.gmra.mxu3 %vm96_vm0, %v2931_v46 }
 0x690   :  { %2202 = vmatmul.msk.f32.gmra.mxu3 %vm96_vm0, %v2936_v40 }
 0x698   :  { %2203 = vmatmul.msk.f32.gmra.mxu3 %vm96_vm0, %v2941_v50 }
 0x6f3   :  { %v680_v7 = vpop.f32.mrf.mxu3 }
 0x6f4   :  { %v2975_v8 = vadd.f32 %v680_v7, %v2972_v4 }
 0x6fb   :  { %v2977_v9 = vpop.f32.mrf.mxu3 }
 0x703   :  { %v2979_v10 = vpop.f32.mrf.mxu3 }
 0x70b   :  { %v2981_v36 = vpop.f32.mrf.mxu3 }
 0x70c   :  { %2208 = vmatmul.msk.f32.vlgmr.msrb.gmra.mxu0 %vm210_vm2, %v2981_v36 }
 0x713   :  { %v2985_v16 = vpop.f32.mrf.mxu3 }
 0x714   :  { %2209 = vmatmul.msk.f32.gmra.mxu0 %vm210_vm2, %v2985_v16 }
 0x71b   :  { %v2989_v54 = vpop.f32.mrf.mxu3 }
 0x71c   :  { %2204 = vmatpush.xpose.msk.msra.mxu2 %vm210_vm2, %v2989_v54  ;;  %2210 = vmatmul.msk.f32.gmra.mxu0 %vm210_vm2, %v2989_v54 }
 0x71d   :  { %1219 = vmatpush.msra.mxu1 %v2989_v54 }
 0x71f   :  { %1220 = vmatpush.msra.mxu1 %v2985_v16 }
 0x720   :  { %2205 = vmatpush.xpose.msk.msra.mxu2 %vm210_vm2, %v2985_v16 }
 0x721   :  { %1221 = vmatpush.msra.mxu1 %v2981_v36 }
 0x724   :  { %2206 = vmatpush.xpose.msk.msra.mxu2 %vm210_vm2, %v2981_v36 }
 0x727   :  { %2207 = vmatmul.msk.f32.vlgmr.msra.gmra.mxu2 %vm210_vm2, %v2185_v11 }
 0x789   :  { %v935_v14 = vpop.f32.mrf.mxu0 }
 0x78a   :  { %946 = vperm.xlu2 %2330, %v935_v14   ;;  %1051 = vperm.xlu0 %2320, %v935_v14  }
 0x791   :  { %v938_v12 = vpop.f32.mrf.mxu0 }
 0x792   :  { %2331 = vset.pattern.permute.xlu0 %v2421_v62  ;;  %1055 = vperm.xlu1 %2322, %v938_v12  }
 0x793   :  { %951 = vperm.xlu0 %2331, %v938_v12   ;;  %2332 = vset.pattern.permute.xlu2 %v2422_v5 }
 0x799   :  { %v941_v15 = vpop.f32.mrf.mxu0 }
 0x79a   :  { %2333 = vset.pattern.permute.xlu1 %v2421_v62  ;;  %1059 = vperm.xlu2 %2332, %v941_v15  }
 0x79b   :  { %956 = vperm.xlu1 %2333, %v941_v15  }
 0x7aa   :  { %v915_v18 = vpop.f32.mrf.mxu2 }
 0x7ab   :  { %v959_v19 = vperm.slane %v915_v18, 0  ;;  %v1062_v24 = vperm.slane %v915_v18, 1 }
 0x7e4   :  { %v947_v20 = vpop.permute.xlu2 %946 }
 0x7e5   :  { %v960_v26 = vadd.f32 %v959_v19, %v947_v20 }
 0x7e7   :  { %v966_v23 = vmul.f32 0.2, %v960_v26  ;;  %vm963_vm11 = vcmp.gt.f32.partialorder %v960_v26, 0.0 }
 0x7e9   :  { %v969_v17 = vsel %vm963_vm11, %v960_v26, %v966_v23 }
 0x7ea   :  { %v972_v22 = vsel %vm697_vm10, %v969_v17, -1e+30 }
 0x7eb   :  { %v975_v29 = vsel %vm133_vm1, %v972_v22, -inf }
 0x7ec   :  { %976 = vmax.xlane.f32.xlu1 %v975_v29 }
 0x7f4   :  { %v1060_v25 = vpop.permute.xlu2 %1059 }
 0x7f5   :  { %v1065_v27 = vadd.f32 %v1062_v24, %v1060_v25 }
 0x7f7   :  { %v1071_v28 = vmul.f32 0.2, %v1065_v27  ;;  %vm1068_vm13 = vcmp.gt.f32.partialorder %v1065_v27, 0.0 }
 0x7f9   :  { %v1074_v30 = vsel %vm1068_vm13, %v1065_v27, %v1071_v28 }
 0x7fa   :  { %v1077_v31 = vsel %vm699_vm12, %v1074_v30, -1e+30  ;;  %v2334_v30 = vpack.i.bf16 %v2985_v16, %v2989_v54 }
 0x7fb   :  { %v1084_v32 = vsel %vm133_vm1, %v1077_v31, -inf }
 0x7fc   :  { %v1052_v33 = vpop.permute.xlu0 %1051  ;;  %1085 = vmax.xlane.f32.xlu1 %v1084_v32 }
 0x7fd   :  { %v1063_v13 = vadd.f32 %v1062_v24, %v1052_v33 }
 0x7ff   :  { %v1069_v37 = vmul.f32 0.2, %v1063_v13  ;;  %vm1066_vm14 = vcmp.gt.f32.partialorder %v1063_v13, 0.0 }
 0x801   :  { %v1072_v38 = vsel %vm1066_vm14, %v1063_v13, %v1069_v37 }
 0x802   :  { %v1075_v39 = vsel %vm697_vm10, %v1072_v38, -1e+30 }
 0x803   :  { %v1078_v41 = vsel %vm133_vm1, %v1075_v39, -inf }
 0x804   :  { %v1056_v0 = vpop.permute.xlu1 %1055  ;;  %1079 = vmax.xlane.f32.xlu2 %v1078_v41 }
 0x805   :  { %v1064_v1 = vadd.f32 %v1062_v24, %v1056_v0  ;;  %v952_v63 = vpop.permute.xlu0 %951 }
 0x806   :  { %v961_v42 = vadd.f32 %v959_v19, %v952_v63 }
 0x807   :  { %v1070_v43 = vmul.f32 0.2, %v1064_v1  ;;  %vm1067_vm3 = vcmp.gt.f32.partialorder %v1064_v1, 0.0 }
 0x808   :  { %v967_v44 = vmul.f32 0.2, %v961_v42  ;;  %vm964_vm4 = vcmp.gt.f32.partialorder %v961_v42, 0.0 }
 0x809   :  { %v1073_v45 = vsel %vm1067_vm3, %v1064_v1, %v1070_v43 }
 0x80a   :  { %v1076_v52 = vsel %vm698_vm15, %v1073_v45, -1e+30  ;;  %v970_v47 = vsel %vm964_vm4, %v961_v42, %v967_v44 }
 0x80b   :  { %v1081_v56 = vsel %vm133_vm1, %v1076_v52, -inf  ;;  %v973_v48 = vsel %vm698_vm15, %v970_v47, -1e+30 }
 0x80c   :  { %1082 = vmax.xlane.f32.xlu0 %v1081_v56  ;;  %v978_v49 = vsel %vm133_vm1, %v973_v48, -inf }
 0x80d   :  { %v957_v60 = vpop.permute.xlu1 %956  ;;  %979 = vmax.xlane.f32.xlu2 %v978_v49 }
 0x80e   :  { %v962_v55 = vadd.f32 %v959_v19, %v957_v60 }
 0x810   :  { %v968_v57 = vmul.f32 0.2, %v962_v55  ;;  %vm965_vm5 = vcmp.gt.f32.partialorder %v962_v55, 0.0 }
 0x812   :  { %v971_v21 = vsel %vm965_vm5, %v962_v55, %v968_v57 }
 0x813   :  { %v974_v58 = vsel %vm699_vm12, %v971_v21, -1e+30 }
 0x814   :  { %v981_v51 = vsel %vm133_vm1, %v974_v58, -inf }
 0x815   :  { %982 = vmax.xlane.f32.xlu0 %v981_v51 }
 0x85f   :  { %v977_v59 = vpop.xlane.xlu1 %976 }
 0x860   :  { %v984_v61 = vsub.f32 %v972_v22, %v977_v59 }
 0x862   :  { %v987_v2 = vmul.f32 1.442695, %v984_v61  ;;  %v2246_v61 = vld [vmem:[%s3550_s2 + $0x350] sm:$0xff] }
 0x864   :  { %2371 = vpow2.f32 %v987_v2 }
 0x86a   :  { %v2372_v3 = vpop.eup %2371 }
 0x86b   :  { %v3032_v7 = vsel %vm697_vm10, %v2372_v3, 0.0  ;;  %v2245_v3 = vld [vmem:[%s3550_s2 + $0x348] sm:$0xff] }
 0x86c   :  { %v996_v11 = vsel %vm133_vm1, %v3032_v7, 0.0 }
 0x86d   :  { %997 = vadd.xlane.f32.xlu1 %v996_v11  ;;  %v2244_v11 = vld [vmem:[%s3550_s2 + $0x340] sm:$0xff] }
 0x86f   :  { %v1086_v18 = vpop.xlane.xlu1 %1085 }
 0x870   :  { %v1089_v20 = vsub.f32 %v1077_v31, %v1086_v18 }
 0x872   :  { %v1094_v27 = vmul.f32 1.442695, %v1089_v20  ;;  %v2241_v20 = vld [vmem:[%s3550_s2 + $0x328] sm:$0xff] }
 0x877   :  { %v1080_v14 = vpop.xlane.xlu2 %1079 }
 0x878   :  { %v1087_v12 = vsub.f32 %v1075_v39, %v1080_v14  ;;  %v2243_v14 = vld [vmem:[%s3550_s2 + $0x338] sm:$0xff] }
 0x87a   :  { %v1090_v15 = vmul.f32 1.442695, %v1087_v12  ;;  %v2242_v12 = vld [vmem:[%s3550_s2 + $0x330] sm:$0xff] }
 0x87c   :  { %2373 = vpow2.f32 %v1090_v15 }
 0x87f   :  { %v1083_v19 = vpop.xlane.xlu0 %1082 }
 0x880   :  { %v1088_v26 = vsub.f32 %v1076_v52, %v1083_v19  ;;  %v980_v23 = vpop.xlane.xlu2 %979 }
 0x881   :  { %v985_v17 = vsub.f32 %v973_v48, %v980_v23 }
 0x882   :  { %v2374_v22 = vpop.eup %2373  ;;  %v1092_v29 = vmul.f32 1.442695, %v1088_v26 }
 0x883   :  { %v989_v24 = vmul.f32 1.442695, %v985_v17  ;;  %v3038_v25 = vsel %vm697_vm10, %v2374_v22, 0.0  ;;  %v2240_v17 = vld [vmem:[%s3550_s2 + $0x320] sm:$0xff] }
 0x884   :  { %2375 = vpow2.f32 %v1092_v29  ;;  %v1099_v28 = vsel %vm133_vm1, %v3038_v25, 0.0 }
 0x885   :  { %2377 = vpow2.f32 %v989_v24  ;;  %1100 = vadd.xlane.f32.xlu2 %v1099_v28 }
 0x886   :  { %2335 = vrot.lane.b32.xlu1 %v2334_v30, %s2423_s11  ;;  %2379 = vpow2.f32 %v1094_v27  ;;  %v2239_v27 = vld [vmem:[%s3550_s2 + $0x318] sm:$0xff]  ;;  %v2238_v30 = vld [vmem:[%s3550_s2 + $0x310] sm:$0xff] }
 0x888   :  { %v983_v31 = vpop.xlane.xlu0 %982 }
 0x889   :  { %v986_v32 = vsub.f32 %v974_v58, %v983_v31 }
 0x88a   :  { %v2376_v33 = vpop.eup %2375 }
 0x88b   :  { %v2378_v13 = vpop.eup %2377  ;;  %v3047_v37 = vsel %vm698_vm15, %v2376_v33, 0.0  ;;  %v991_v38 = vmul.f32 1.442695, %v986_v32 }
 0x88c   :  { %v1102_v39 = vsel %vm133_vm1, %v3047_v37, 0.0  ;;  %v3053_v16 = vsel %vm698_vm15, %v2378_v13, 0.0  ;;  %v2380_v41 = vpop.eup %2379 }
 0x88d   :  { %1103 = vadd.xlane.f32.xlu0 %v1102_v39  ;;  %v999_v54 = vsel %vm133_vm1, %v3053_v16, 0.0  ;;  %2381 = vpow2.f32 %v991_v38  ;;  %v3059_v0 = vsel %vm699_vm12, %v2380_v41, 0.0 }
 0x88e   :  { %1000 = vadd.xlane.f32.xlu2 %v999_v54  ;;  %v1105_v1 = vsel %vm133_vm1, %v3059_v0, 0.0  ;;  %v2237_v54 = vld [vmem:[%s3550_s2 + $0x308] sm:$0xff] }
 0x893   :  { %v2382_v63 = vpop.eup %2381 }
 0x894   :  { %v3065_v42 = vsel %vm699_vm12, %v2382_v63, 0.0 }
 0x895   :  { %1106 = vadd.xlane.f32.xlu0 %v1105_v1  ;;  %v1002_v43 = vsel %vm133_vm1, %v3065_v42, 0.0 }
 0x89d   :  { %1003 = vadd.xlane.f32.xlu0 %v1002_v43 }
 0x8a6   :  { %1153 = vrot.lane.b32.xlu2 %v2981_v36, %s2423_s11  ;;  %v2247_v36 = vld [vmem:[%s3550_s2 + $0x358] sm:$0xff] }
 0x8a7   :  { %1422 = vmatpush.msrb.mxu1 %v2247_v36 }
 0x8a9   :  { %1423 = vmatpush.msrb.mxu1 %v2246_v61 }
 0x8ab   :  { %1424 = vmatpush.msrb.mxu1 %v2245_v3  ;;  %v2233_v3 = vld [vmem:[%s3550_s2 + $0x2e8] sm:$0xff] }
 0x8ad   :  { %1425 = vmatpush.msrb.mxu1 %v2244_v11 }
 0x8af   :  { %1426 = vmatpush.msrb.mxu1 %v2243_v14 }
 0x8b1   :  { %1427 = vmatpush.msrb.mxu1 %v2242_v12 }
 0x8b3   :  { %1428 = vmatpush.msrb.mxu1 %v2241_v20 }
 0x8b5   :  { %1429 = vmatpush.msrb.mxu1 %v2240_v17 }
 0x8b7   :  { %1430 = vmatpush.msrb.mxu1 %v2239_v27 }
 0x8b9   :  { %1431 = vmatpush.msrb.mxu1 %v2238_v30 }
 0x8bb   :  { %1432 = vmatpush.msrb.mxu1 %v2237_v54 }
 0x8e0   :  { %v998_v44 = vpop.xlane.xlu1 %997 }
 0x8e1   :  { %2383 = vrcp.f32 %v998_v44  ;;  %v1016_v56 = vand.u32 2147483648, %v998_v44  ;;  %v1014_v49 = vand.u32 2147483647, %v998_v44  ;;  %vm1010_vm7 = vweird.f32 %v998_v44 }
 0x8e3   :  { %v1017_v55 = vor.u32 1.1754944e-38, %v1016_v56  ;;  %vm1015_vm9 = vcmp.eq.f32.partialorder %v1014_v49, 8.507059e+37  ;;  %v2235_v49 = vld [vmem:[%s3550_s2 + $0x2f8] sm:$0xff] }
 0x8e7   :  { %v2384_v45 = vpop.eup %2383 }
 0x8e8   :  { %v1006_v52 = vmul.f32 %v2384_v45, %v998_v44  ;;  %vm1011_vm6 = vweird.f32 %v2384_v45 }
 0x8e9   :  { %vm1012_vm8 = vmor %vm1010_vm7, %vm1011_vm6 }
 0x8ea   :  { %v1007_v47 = vsub.f32 1.0, %v1006_v52 }
 0x8ec   :  { %v1008_v48 = vmul.f32 %v2384_v45, %v1007_v47 }
 0x8ee   :  { %v1009_v60 = vadd.f32 %v2384_v45, %v1008_v48 }
 0x8f0   :  { %v1013_v57 = vsel %vm1012_vm8, %v2384_v45, %v1009_v60  ;;  %v2236_v45 = vld [vmem:[%s3550_s2 + $0x300] sm:$0xff] }
 0x8f1   :  { %v1018_v21 = vsel %vm1015_vm9, %v1017_v55, %v1013_v57  ;;  %1433 = vmatpush.msrb.mxu1 %v2236_v45  ;;  %v2173_v45 = vld [vmem:[%s3550_s2 + $0x230] sm:$0xff] }
 0x8f2   :  { %v1047_v58 = vmul.f32 %v1018_v21, %v3032_v7  ;;  %v2234_v21 = vld [vmem:[%s3550_s2 + $0x2f0] sm:$0xff] }
 0x8f3   :  { %1434 = vmatpush.msrb.mxu1 %v2235_v49 }
 0x8f4   :  { %2214 = vmatmul.msk.f32.vlgmr.msra.gmra.mxu1 %vm133_vm1, %v1047_v58 }
 0x8f5   :  { %1435 = vmatpush.msrb.mxu1 %v2234_v21 }
 0x8f7   :  { %1436 = vmatpush.msrb.mxu1 %v2233_v3 }
 0x8f8   :  { %v1101_v51 = vpop.xlane.xlu2 %1100  ;;  %v2336_v59 = vpop.permute.xlu1 %2335 }
 0x8f9   :  { %2385 = vrcp.f32 %v1101_v51  ;;  %v2337_v2 = vunpack.i.l.bf16 %v2336_v59  ;;  %v2338_v7 = vunpack.i.h.bf16 %v2336_v59  ;;  %v1119_v22 = vand.u32 2147483648, %v1101_v51 }
 0x8fa   :  { %v1117_v24 = vand.u32 2147483647, %v1101_v51  ;;  %vm1113_vm11 = vweird.f32 %v1101_v51 }
 0x8fb   :  { %1184 = vmatpush.msrb.mxu2 %v2337_v2  ;;  %v1120_v32 = vor.u32 1.1754944e-38, %v1119_v22 }
 0x8fc   :  { %vm1118_vm13 = vcmp.eq.f32.partialorder %v1117_v24, 8.507059e+37 }
 0x8fd   :  { %1185 = vmatpush.msrb.mxu2 %v2338_v7 }
 0x8ff   :  { %v2386_v15 = vpop.eup %2385 }
 0x900   :  { %v1109_v18 = vmul.f32 %v2386_v15, %v1101_v51  ;;  %v3091_v19 = vpop.xlane.xlu0 %1103  ;;  %vm1114_vm10 = vweird.f32 %v2386_v15 }
 0x901   :  { %2387 = vrcp.f32 %v3091_v19  ;;  %v3097_v26 = vpop.xlane.xlu2 %1000  ;;  %vm1115_vm12 = vmor %vm1113_vm11, %vm1114_vm10  ;;  %v1133_v52 = vand.u32 2147483648, %v3091_v19  ;;  %v1131_v48 = vand.u32 2147483647, %v3091_v19  ;;  %vm1127_vm15 = vweird.f32 %v3091_v19 }
 0x902   :  { %v1110_v23 = vsub.f32 1.0, %v1109_v18  ;;  %2389 = vrcp.f32 %v3097_v26  ;;  %v1028_v57 = vand.u32 2147483647, %v3097_v26  ;;  %vm1024_vm5 = vweird.f32 %v3097_v26  ;;  %v2232_v18 = vld [vmem:[%s3550_s2 + $0x2e0] sm:$0xff] }
 0x903   :  { %v1134_v36 = vor.u32 1.1754944e-38, %v1133_v52  ;;  %vm1132_vm6 = vcmp.eq.f32.partialorder %v1131_v48, 8.507059e+37  ;;  %1437 = vmatpush.msrb.mxu1 %v2232_v18  ;;  %v2251_v52 = vld [vmem:[%s3550_s2 + $0x378] sm:$0xff] }
 0x904   :  { %v1111_v29 = vmul.f32 %v2386_v15, %v1110_v23  ;;  %vm1029_vm8 = vcmp.eq.f32.partialorder %v1028_v57, 8.507059e+37 }
 0x906   :  { %v1112_v28 = vadd.f32 %v2386_v15, %v1111_v29 }
 0x907   :  { %v2388_v31 = vpop.eup %2387 }
 0x908   :  { %v2390_v33 = vpop.eup %2389  ;;  %v1116_v13 = vsel %vm1115_vm12, %v2386_v15, %v1112_v28  ;;  %v1123_v38 = vmul.f32 %v2388_v31, %v3091_v19  ;;  %v3110_v39 = vpop.xlane.xlu0 %1106  ;;  %vm1128_vm14 = vweird.f32 %v2388_v31 }
 0x909   :  { %v1121_v41 = vsel %vm1118_vm13, %v1120_v32, %v1116_v13  ;;  %v1020_v1 = vmul.f32 %v2390_v33, %v3097_v26  ;;  %2391 = vrcp.f32 %v3110_v39  ;;  %v1154_v63 = vpop.permute.xlu2 %1153  ;;  %vm1025_vm3 = vweird.f32 %v2390_v33  ;;  %vm1129_vm4 = vmor %vm1127_vm15, %vm1128_vm14 }
 0x90a   :  { %v1124_v43 = vsub.f32 1.0, %v1123_v38  ;;  %1186 = vmatpush.msrb.mxu2 %v1154_v63  ;;  %v1150_v44 = vmul.f32 %v1121_v41, %v3038_v25  ;;  %v1030_v25 = vand.u32 2147483648, %v3097_v26  ;;  %vm1026_vm7 = vmor %vm1024_vm5, %vm1025_vm3  ;;  %v1147_v19 = vand.u32 2147483648, %v3110_v39  ;;  %v2228_v63 = vld [vmem:[%s3551_s0 + $0x40] sm:$0xff] }
 0x90b   :  { %v1021_v47 = vsub.f32 1.0, %v1020_v1  ;;  %v1145_v17 = vand.u32 2147483647, %v3110_v39  ;;  %vm1141_vm10 = vweird.f32 %v3110_v39  ;;  %v2227_v1 = vld [vmem:[%s3551_s0 + $0x38] sm:$0xff] }
 0x90c   :  { %v1125_v56 = vmul.f32 %v2388_v31, %v1124_v43  ;;  %2211 = vmatmul.msk.f32.vlgmr.msrb.gmra.mxu2 %vm133_vm1, %v1150_v44  ;;  %v1031_v7 = vor.u32 1.1754944e-38, %v1030_v25  ;;  %v1148_v29 = vor.u32 1.1754944e-38, %v1147_v19  ;;  %v2175_v43 = vld [vmem:[%s3550_s2 + $0x240] sm:$0xff]  ;;  %v2174_v44 = vld [vmem:[%s3550_s2 + $0x238] sm:$0xff]  ;;  %v1235_v25 = vperm.slane %v2837_v53, 2 }
 0x90d   :  { %v1022_v60 = vmul.f32 %v2390_v33, %v1021_v47  ;;  %vm1146_vm12 = vcmp.eq.f32.partialorder %v1145_v17, 8.507059e+37  ;;  %v2250_v47 = vld [vmem:[%s3550_s2 + $0x370] sm:$0xff] }
 0x90e   :  { %v1126_v55 = vadd.f32 %v2388_v31, %v1125_v56  ;;  %v2249_v56 = vld [vmem:[%s3550_s2 + $0x368] sm:$0xff] }
 0x90f   :  { %v2392_v58 = vpop.eup %2391  ;;  %v1023_v51 = vadd.f32 %v2390_v33, %v1022_v60 }
 0x910   :  { %v1137_v59 = vmul.f32 %v2392_v58, %v3110_v39  ;;  %v1004_v61 = vpop.xlane.xlu0 %1003  ;;  %v1130_v2 = vsel %vm1129_vm4, %v2388_v31, %v1126_v55  ;;  %vm1142_vm9 = vweird.f32 %v2392_v58  ;;  %v2248_v55 = vld [vmem:[%s3550_s2 + $0x360] sm:$0xff]  ;;  %vm2070_vm4 = vcmask 1043456  }
 0x911   :  { %2393 = vrcp.f32 %v1004_v61  ;;  %v1135_v11 = vsel %vm1132_vm6, %v1134_v36, %v1130_v2  ;;  %v1027_v15 = vsel %vm1026_vm7, %v2390_v33, %v1023_v51  ;;  %vm1143_vm11 = vmor %vm1141_vm10, %vm1142_vm9  ;;  %v1042_v33 = vand.u32 2147483647, %v1004_v61 }
 0x912   :  { %v1138_v14 = vsub.f32 1.0, %v1137_v59  ;;  %v1151_v12 = vmul.f32 %v1135_v11, %v3047_v37  ;;  %v1032_v20 = vsel %vm1029_vm8, %v1031_v7, %v1027_v15  ;;  %vm1038_vm14 = vweird.f32 %v1004_v61 }
 0x913   :  { %v1048_v23 = vmul.f32 %v1032_v20, %v3053_v16  ;;  %v1044_v16 = vand.u32 2147483648, %v1004_v61  ;;  %vm1043_vm3 = vcmp.eq.f32.partialorder %v1042_v33, 8.507059e+37 }
 0x914   :  { %v1139_v26 = vmul.f32 %v2392_v58, %v1138_v14  ;;  %2212 = vmatmul.msk.f32.gmra.mxu2 %vm133_vm1, %v1151_v12 }
 0x915   :  { %2215 = vmatmul.msk.f32.gmra.mxu1 %vm133_vm1, %v1048_v23  ;;  %v1045_v38 = vor.u32 1.1754944e-38, %v1044_v16 }
 0x916   :  { %v1140_v37 = vadd.f32 %v2392_v58, %v1139_v26  ;;  %v3195_v26 = vld [vmem:[%s3550_s2 + $0x448] sm:$0x1f] }
 0x917   :  { %v2394_v22 = vpop.eup %2393 }
 0x918   :  { %v1034_v24 = vmul.f32 %v2394_v22, %v1004_v61  ;;  %v1144_v27 = vsel %vm1143_vm11, %v2392_v58, %v1140_v37  ;;  %vm1039_vm13 = vweird.f32 %v2394_v22  ;;  %v1421_v37 = vperm.slane %v3195_v26, 0 }
 0x919   :  { %v1149_v28 = vsel %vm1146_vm12, %v1148_v29, %v1144_v27  ;;  %vm1040_vm15 = vmor %vm1038_vm14, %vm1039_vm13 }
 0x91a   :  { %v1035_v30 = vsub.f32 1.0, %v1034_v24  ;;  %v1152_v31 = vmul.f32 %v1149_v28, %v3059_v0  ;;  %v2226_v0 = vld [vmem:[%s3551_s0 + $0x30] sm:$0xff] }
 0x91c   :  { %v1036_v32 = vmul.f32 %v2394_v22, %v1035_v30  ;;  %2213 = vmatmul.msk.f32.gmra.mxu2 %vm133_vm1, %v1152_v31 }
 0x91e   :  { %v1037_v13 = vadd.f32 %v2394_v22, %v1036_v32 }
 0x920   :  { %v1041_v39 = vsel %vm1040_vm15, %v2394_v22, %v1037_v13 }
 0x921   :  { %v1046_v54 = vsel %vm1043_vm3, %v1045_v38, %v1041_v39  ;;  %v3220_v38 = vld [vmem:[%s3552_s1 + $0x30] sm:$0xff] }
 0x922   :  { %v1049_v41 = vmul.f32 %v1046_v54, %v3065_v42  ;;  %v2176_v42 = vld [vmem:[%s3550_s2 + $0x248] sm:$0xff]  ;;  %vm1371_vm5 = vcmp.gt.f32.partialorder %v3220_v38, 0.0 }
 0x923   :  { %1266 = vmatpush.msra.mxu3 %v2176_v42 }
 0x924   :  { %2216 = vmatmul.msk.f32.gmra.mxu1 %vm133_vm1, %v1049_v41 }
 0x925   :  { %1267 = vmatpush.msra.mxu3 %v2175_v43 }
 0x927   :  { %1268 = vmatpush.msra.mxu3 %v2174_v44  ;;  %v2184_v44 = vld [vmem:[%s3550_s2 + $0x288] sm:$0xff] }
 0x928   :  { %1346 = vmatpush.msra.mxu0 %v2184_v44 }
 0x929   :  { %1269 = vmatpush.msra.mxu3 %v2173_v45  ;;  %v2183_v45 = vld [vmem:[%s3550_s2 + $0x280] sm:$0xff] }
 0x92a   :  { %1347 = vmatpush.msra.mxu0 %v2183_v45  ;;  %v2268_v45 = vld [vmem:[%s3550_s2 + $0x400] sm:$0x3] }
 0x92b   :  { %1469 = vmatpush.msrb.mxu3 %v2251_v52 }
 0x92c   :  { %1438 = vmatmul.f32.vlgmr.msrb.gmra.mxu1 %v2226_v0 }
 0x92d   :  { %1470 = vmatpush.msrb.mxu3 %v2250_v47 }
 0x92f   :  { %1471 = vmatpush.msrb.mxu3 %v2249_v56 }
 0x931   :  { %1472 = vmatpush.msrb.mxu3 %v2248_v55  ;;  %v2178_v55 = vld [vmem:[%s3550_s2 + $0x258] sm:$0xff] }
 0x934   :  { %1441 = vmatmul.f32.gmra.mxu1 %v2227_v1 }
 0x93c   :  { %1444 = vmatmul.f32.gmra.mxu1 %v2228_v63 }
 0x971   :  { %v1223_v48 = vpop.f32.mrf.mxu1 }
 0x98f   :  { %v1188_v49 = vpop.f32.mrf.mxu2 }
 0x990   :  { %v1224_v60 = vadd.f32 %v1223_v48, %v1188_v49  ;;  %v2181_v49 = vld [vmem:[%s3550_s2 + $0x270] sm:$0xff] }
 0x992   :  { %v1232_v57 = vmul.f32 0.5, %v1224_v60  ;;  %v1226_v36 = vpop.f32.mrf.mxu1  ;;  %v2180_v60 = vld [vmem:[%s3550_s2 + $0x268] sm:$0xff] }
 0x994   :  { %v1236_v21 = vadd.f32 %v1235_v25, %v1232_v57  ;;  %v2177_v57 = vld [vmem:[%s3550_s2 + $0x250] sm:$0xff] }
 0x996   :  { %v1239_v58 = vadd.f32 %v1236_v21, %v2931_v46  ;;  %v2255_v21 = vld [vmem:[%s3550_s2 + $0x398] sm:$0xff] }
 0x997   :  { %v1191_v51 = vpop.f32.mrf.mxu2 }
 0x998   :  { %v1242_v59 = vmax.f32 %v1239_v58, 0.0  ;;  %v1227_v61 = vadd.f32 %v1226_v36, %v1191_v51  ;;  %v2254_v58 = vld [vmem:[%s3550_s2 + $0x390] sm:$0xff]  ;;  %v2253_v36 = vld [vmem:[%s3550_s2 + $0x388] sm:$0xff]  ;;  %v2252_v51 = vld [vmem:[%s3550_s2 + $0x380] sm:$0xff] }
 0x99a   :  { %v1233_v2 = vmul.f32 0.5, %v1227_v61  ;;  %2217 = vmatmul.msk.f32.vlgmr.msra.gmra.mxu3 %vm96_vm0, %v1242_v59  ;;  %v2259_v61 = vld [vmem:[%s3550_s2 + $0x3b8] sm:$0xff] }
 0x99c   :  { %v1237_v3 = vadd.f32 %v1235_v25, %v1233_v2 }
 0x99e   :  { %v1240_v7 = vadd.f32 %v1237_v3, %v2936_v40  ;;  %v2258_v3 = vld [vmem:[%s3550_s2 + $0x3b0] sm:$0xff] }
 0x99f   :  { %v1194_v14 = vpop.f32.mrf.mxu2 }
 0x9a0   :  { %v1243_v11 = vmax.f32 %v1240_v7, 0.0  ;;  %v2257_v7 = vld [vmem:[%s3550_s2 + $0x3a8] sm:$0xff] }
 0x9a1   :  { %v1229_v12 = vpop.f32.mrf.mxu1 }
 0x9a2   :  { %v1230_v15 = vadd.f32 %v1229_v12, %v1194_v14  ;;  %2218 = vmatmul.msk.f32.gmra.mxu3 %vm96_vm0, %v1243_v11 }
 0x9a4   :  { %v1234_v18 = vmul.f32 0.5, %v1230_v15  ;;  %v1483_v15 = vperm.slane %v3195_v26, 1 }
 0x9a6   :  { %v1238_v19 = vadd.f32 %v1235_v25, %v1234_v18  ;;  %v2179_v25 = vld [vmem:[%s3550_s2 + $0x260] sm:$0xff] }
 0x9a8   :  { %v1241_v20 = vadd.f32 %v1238_v19, %v2941_v50 }
 0x9a9   :  { %v1439_v23 = vpop.f32.mrf.mxu1 }
 0x9aa   :  { %v1244_v17 = vmax.f32 %v1241_v20, 0.0  ;;  %v3199_v22 = vadd.f32 %v1439_v23, %v1421_v37  ;;  %v687_v23 = vadd.f32 %v2979_v10, %v2972_v4 }
 0x9ac   :  { %2219 = vmatmul.msk.f32.gmra.mxu3 %vm96_vm0, %v1244_v17 }
 0x9b1   :  { %v1442_v29 = vpop.f32.mrf.mxu1 }
 0x9b2   :  { %v3203_v24 = vadd.f32 %v1442_v29, %v1421_v37  ;;  %v2072_v29 = vrot.slane %v687_v23, 4 }
 0x9b4   :  { %2278 = vmatmul.msk.f32.vlgmr.msrb.gmra.mxu3 %vm96_vm0, %v3199_v22 }
 0x9b9   :  { %v1445_v27 = vpop.f32.mrf.mxu1 }
 0x9ba   :  { %v3207_v28 = vadd.f32 %v1445_v27, %v1421_v37  ;;  %v3304_v37 = vadd.f32 %v2977_v9, %v2972_v4 }
 0x9bc   :  { %2279 = vmatmul.msk.f32.gmra.mxu3 %vm96_vm0, %v3203_v24  ;;  %v2071_v27 = vrot.slane %v3304_v37, 4 }
 0x9c4   :  { %2280 = vmatmul.msk.f32.gmra.mxu3 %vm96_vm0, %v3207_v28 }
 0xa1d   :  { %v1271_v30 = vpop.f32.mrf.mxu3 }
 0xa25   :  { %v1274_v31 = vpop.f32.mrf.mxu3 }
 0xa2f   :  { %v1277_v16 = vpop.f32.mrf.mxu3 }
 0xa30   :  { %1294 = vmatpush.msra.mxu2 %v1277_v16 }
 0xa32   :  { %1295 = vmatpush.msra.mxu2 %v1274_v31 }
 0xa34   :  { %1296 = vmatpush.msra.mxu2 %v1271_v30 }
 0xa35   :  { %2220 = vmatmul.msk.f32.vlgmr.msra.gmra.mxu2 %vm133_vm1, %v2862_v6  ;;  %v3227_v6 = vld [vmem:[%s3552_s1 + $0x38] sm:$0xff] }
 0xa36   :  { %vm1372_vm10 = vcmp.gt.f32.partialorder %v3227_v6, 0.0 }
 0xa37   :  { %v1474_v32 = vpop.f32.mrf.mxu3 }
 0xa3d   :  { %2221 = vmatmul.msk.f32.gmra.mxu2 %vm133_vm1, %v2869_v34  ;;  %v3234_v34 = vld [vmem:[%s3552_s1 + $0x40] sm:$0xff] }
 0xa3e   :  { %vm1373_vm7 = vcmp.gt.f32.partialorder %v3234_v34, 0.0 }
 0xa3f   :  { %v1477_v33 = vpop.f32.mrf.mxu3 }
 0xa45   :  { %2222 = vmatmul.msk.f32.gmra.mxu2 %vm133_vm1, %v2876_v35  ;;  %v1280_v35 = vperm.slane %v2837_v53, 3  ;;  %v2182_v53 = vld [vmem:[%s3550_s2 + $0x278] sm:$0xff] }
 0xa46   :  { %1348 = vmatpush.msra.mxu0 %v2182_v53 }
 0xa47   :  { %v1480_v13 = vpop.f32.mrf.mxu3 }
 0xa48   :  { %1506 = vmatpush.msrb.mxu2 %v1480_v13  ;;  %1349 = vmatpush.msra.mxu0 %v2181_v49  ;;  %v2274_v13 = vld [vmem:[%s3550_s2 + $0x430] sm:$0xff] }
 0xa4a   :  { %1507 = vmatpush.msrb.mxu2 %v1477_v33  ;;  %1350 = vmatpush.msra.mxu0 %v2180_v60  ;;  %v2276_v33 = vld [vmem:[%s3550_s2 + $0x440] sm:$0xff] }
 0xa4b   :  { %1600 = vmatpush.msra.mxu1 %v2276_v33 }
 0xa4c   :  { %1508 = vmatpush.msrb.mxu2 %v1474_v32  ;;  %1351 = vmatpush.msra.mxu0 %v2179_v25 }
 0xa4d   :  { %2281 = vmatmul.msk.f32.vlgmr.msrb.gmra.mxu2 %vm133_vm1, %v3220_v38 }
 0xa4e   :  { %1352 = vmatpush.msra.mxu0 %v2178_v55 }
 0xa50   :  { %1353 = vmatpush.msra.mxu0 %v2177_v57 }
 0xa52   :  { %1546 = vmatpush.msrb.mxu0 %v2255_v21 }
 0xa54   :  { %1547 = vmatpush.msrb.mxu0 %v2254_v58 }
 0xa55   :  { %2282 = vmatmul.msk.f32.gmra.mxu2 %vm133_vm1, %v3227_v6 }
 0xa56   :  { %1548 = vmatpush.msrb.mxu0 %v2253_v36 }
 0xa58   :  { %1549 = vmatpush.msrb.mxu0 %v2252_v51 }
 0xa5d   :  { %2283 = vmatmul.msk.f32.gmra.mxu2 %vm133_vm1, %v3234_v34 }
 0xab8   :  { %v1298_v39 = vpop.f32.mrf.mxu2 }
 0xab9   :  { %v1299_v54 = vadd.f32 %v1298_v39, %v1280_v35  ;;  %v2271_v39 = vld [vmem:[%s3550_s2 + $0x418] sm:$0xff] }
 0xabb   :  { %v1307_v41 = vadd.f32 %v1299_v54, %v1242_v59  ;;  %v2270_v54 = vld [vmem:[%s3550_s2 + $0x410] sm:$0xff] }
 0xabd   :  { %v1310_v0 = vmax.f32 %v1307_v41, 0.0  ;;  %v2269_v41 = vld [vmem:[%s3550_s2 + $0x408] sm:$0xff] }
 0xabf   :  { %1316 = vrot.lane.b32.xlu0 %v1310_v0, %s2424_s22 }
 0xac0   :  { %v1301_v1 = vpop.f32.mrf.mxu2 }
 0xac1   :  { %v1302_v63 = vadd.f32 %v1301_v1, %v1280_v35 }
 0xac3   :  { %v1308_v42 = vadd.f32 %v1302_v63, %v1243_v11  ;;  %v2256_v11 = vld [vmem:[%s3550_s2 + $0x3a0] sm:$0xff] }
 0xac5   :  { %v1311_v43 = vmax.f32 %v1308_v42, 0.0 }
 0xac7   :  { %1318 = vrot.lane.b32.xlu1 %v1311_v43, %s2424_s22 }
 0xac8   :  { %v1304_v52 = vpop.f32.mrf.mxu2 }
 0xac9   :  { %v1305_v47 = vadd.f32 %v1304_v52, %v1280_v35  ;;  %v2272_v35 = vld [vmem:[%s3550_s2 + $0x420] sm:$0xff] }
 0xacb   :  { %v1309_v56 = vadd.f32 %v1305_v47, %v1244_v17 }
 0xacd   :  { %v1312_v48 = vmax.f32 %v1309_v56, 0.0 }
 0xacf   :  { %1320 = vrot.lane.b32.xlu2 %v1312_v48, %s2424_s22 }
 0xad0   :  { %v1510_v12 = vpop.f32.mrf.mxu2 }
 0xad1   :  { %v1511_v19 = vadd.f32 %v1510_v12, %v1483_v15 }
 0xad8   :  { %v1513_v17 = vpop.f32.mrf.mxu2 }
 0xad9   :  { %v1514_v31 = vadd.f32 %v1513_v17, %v1483_v15 }
 0xadb   :  { %v1520_v10 = vadd.f32 %v1514_v31, %v3203_v24  ;;  %v2275_v24 = vld [vmem:[%s3550_s2 + $0x438] sm:$0xff] }
 0xadc   :  { %1601 = vmatpush.msra.mxu1 %v2275_v24 }
 0xadd   :  { %v3314_v4 = vmax.f32 %v1520_v10, 0.0 }
 0xade   :  { %1602 = vmatpush.msra.mxu1 %v2274_v13 }
 0xae0   :  { %v1516_v16 = vpop.f32.mrf.mxu2 }
 0xae1   :  { %v1517_v9 = vadd.f32 %v1516_v16, %v1483_v15 }
 0xb29   :  { %v1321_v18 = vpop.permute.xlu2 %1320 }
 0xb2a   :  { %v1327_v20 = vsel %vm96_vm0, %v2941_v50, %v1321_v18  ;;  %v2073_v50 = vsel %vm2070_vm4, %v2071_v27, %v2072_v29 }
 0xb31   :  { %v1317_v59 = vpop.permute.xlu0 %1316 }
 0xb32   :  { %v1325_v2 = vsel %vm96_vm0, %v2931_v46, %v1317_v59 }
 0xb33   :  { %2223 = vmatmul.msk.f32.vlgmr.msra.gmra.mxu0 %vm210_vm2, %v1325_v2 }
 0xb34   :  { %1940 = vmatpush.msra.mxu0 %v2259_v61 }
 0xb36   :  { %1941 = vmatpush.msra.mxu0 %v2258_v3 }
 0xb38   :  { %1942 = vmatpush.msra.mxu0 %v2257_v7 }
 0xb39   :  { %v1319_v14 = vpop.permute.xlu1 %1318 }
 0xb3a   :  { %v1326_v46 = vsel %vm96_vm0, %v2936_v40, %v1319_v14  ;;  %1943 = vmatpush.msra.mxu0 %v2256_v11  ;;  %v1519_v40 = vadd.f32 %v1511_v19, %v3199_v22  ;;  %v1521_v22 = vadd.f32 %v1517_v9, %v3207_v28  ;;  %v2273_v28 = vld [vmem:[%s3550_s2 + $0x428] sm:$0xff] }
 0xb3b   :  { %2224 = vmatmul.msk.f32.gmra.mxu0 %vm210_vm2, %v1326_v46  ;;  %1603 = vmatpush.msra.mxu1 %v2273_v28 }
 0xb3c   :  { %v3308_v30 = vmax.f32 %v1519_v40, 0.0  ;;  %v3319_v32 = vmax.f32 %v1521_v22, 0.0 }
 0xb3d   :  { %1604 = vmatpush.msra.mxu1 %v2272_v35 }
 0xb3f   :  { %1605 = vmatpush.msra.mxu1 %v2271_v39 }
 0xb41   :  { %1606 = vmatpush.msra.mxu1 %v2270_v54 }
 0xb43   :  { %2225 = vmatmul.msk.f32.gmra.mxu0 %vm210_vm2, %v1327_v20  ;;  %1607 = vmatpush.msra.mxu1 %v2269_v41 }
 0xb4b   :  { %2284 = vmatmul.msk.f32.vlgmr.msrb.gmra.mxu0 %vm96_vm0, %v3308_v30 }
 0xb4c   :  { %2312 = vmatpush.xpose.msk.msrb.mxu0 %vm96_vm0, %v2073_v50 }
 0xb53   :  { %2285 = vmatmul.msk.f32.gmra.mxu0 %vm96_vm0, %v3314_v4 }
 0xb5b   :  { %2286 = vmatmul.msk.f32.gmra.mxu0 %vm96_vm0, %v3319_v32 }
 0xbb0   :  { %v3347_v0 = vpop.f32.mrf.mxu0 }
 0xbb8   :  { %v3349_v1 = vpop.f32.mrf.mxu0 }
 0xbc0   :  { %v1361_v63 = vpop.f32.mrf.mxu0 }
 0xbc8   :  { %v3351_v42 = vpop.f32.mrf.mxu0 }
 0xbc9   :  { %2291 = vmatmul.msk.f32.vlgmr.msra.gmra.mxu1 %vm210_vm2, %v3351_v42 }
 0xbd0   :  { %v3355_v43 = vpop.f32.mrf.mxu0 }
 0xbd1   :  { %2292 = vmatmul.msk.f32.gmra.mxu1 %vm210_vm2, %v3355_v43 }
 0xbd8   :  { %v3359_v44 = vpop.f32.mrf.mxu0 }
 0xbd9   :  { %2287 = vmatpush.xpose.msk.msra.mxu3 %vm210_vm2, %v3359_v44  ;;  %2293 = vmatmul.msk.f32.gmra.mxu1 %vm210_vm2, %v3359_v44 }
 0xbda   :  { %1893 = vmatpush.msra.mxu2 %v3359_v44 }
 0xbdc   :  { %1894 = vmatpush.msra.mxu2 %v3355_v43 }
 0xbdd   :  { %2288 = vmatpush.xpose.msk.msra.mxu3 %vm210_vm2, %v3355_v43 }
 0xbde   :  { %1895 = vmatpush.msra.mxu2 %v3351_v42 }
 0xbe1   :  { %2289 = vmatpush.xpose.msk.msra.mxu3 %vm210_vm2, %v3351_v42 }
 0xbe4   :  { %2290 = vmatmul.msk.f32.vlgmr.msra.gmra.mxu3 %vm210_vm2, %v2268_v45 }
 0xc46   :  { %v1609_v53 = vpop.f32.mrf.mxu1 }
 0xc47   :  { %1725 = vperm.xlu2 %2332, %v1609_v53   ;;  %1620 = vperm.xlu1 %2333, %v1609_v53  }
 0xc4e   :  { %v1612_v52 = vpop.f32.mrf.mxu1 }
 0xc4f   :  { %2339 = vset.pattern.permute.xlu1 %v2422_v5  ;;  %1625 = vperm.xlu0 %2331, %v1612_v52  }
 0xc50   :  { %1729 = vperm.xlu1 %2339, %v1612_v52   ;;  %2340 = vset.pattern.permute.xlu2 %v2421_v62 }
 0xc56   :  { %v1615_v47 = vpop.f32.mrf.mxu1 }
 0xc57   :  { %2341 = vset.pattern.permute.xlu0 %v2422_v5  ;;  %1630 = vperm.xlu2 %2340, %v1615_v47  }
 0xc58   :  { %1733 = vperm.xlu0 %2341, %v1615_v47  }
 0xc67   :  { %v1589_v56 = vpop.f32.mrf.mxu3 }
 0xc68   :  { %v1736_v48 = vperm.slane %v1589_v56, 1  ;;  %v1633_v62 = vperm.slane %v1589_v56, 0  ;;  %v2342_v56 = vpack.i.bf16 %v3355_v43, %v3359_v44 }
 0xca1   :  { %v1726_v49 = vpop.permute.xlu2 %1725 }
 0xca2   :  { %v1737_v60 = vadd.f32 %v1736_v48, %v1726_v49 }
 0xca4   :  { %v1743_v25 = vmul.f32 0.2, %v1737_v60  ;;  %vm1740_vm6 = vcmp.gt.f32.partialorder %v1737_v60, 0.0 }
 0xca6   :  { %v1746_v55 = vsel %vm1740_vm6, %v1737_v60, %v1743_v25 }
 0xca7   :  { %v1749_v57 = vsel %vm1371_vm5, %v1746_v55, -1e+30 }
 0xca8   :  { %v1752_v21 = vsel %vm133_vm1, %v1749_v57, -inf }
 0xca9   :  { %1753 = vmax.xlane.f32.xlu2 %v1752_v21 }
 0xcb1   :  { %v1631_v58 = vpop.permute.xlu2 %1630 }
 0xcb2   :  { %v1636_v5 = vadd.f32 %v1633_v62, %v1631_v58 }
 0xcb4   :  { %v1642_v36 = vmul.f32 0.2, %v1636_v5  ;;  %vm1639_vm8 = vcmp.gt.f32.partialorder %v1636_v5, 0.0 }
 0xcb6   :  { %v1645_v51 = vsel %vm1639_vm8, %v1636_v5, %v1642_v36 }
 0xcb7   :  { %v1648_v59 = vsel %vm1373_vm7, %v1645_v51, -1e+30 }
 0xcb8   :  { %v1655_v61 = vsel %vm133_vm1, %v1648_v59, -inf }
 0xcb9   :  { %v1621_v2 = vpop.permute.xlu1 %1620  ;;  %1656 = vmax.xlane.f32.xlu2 %v1655_v61 }
 0xcba   :  { %v1634_v3 = vadd.f32 %v1633_v62, %v1621_v2 }
 0xcbc   :  { %v1640_v7 = vmul.f32 0.2, %v1634_v3  ;;  %vm1637_vm9 = vcmp.gt.f32.partialorder %v1634_v3, 0.0 }
 0xcbe   :  { %v1643_v11 = vsel %vm1637_vm9, %v1634_v3, %v1640_v7 }
 0xcbf   :  { %v1646_v14 = vsel %vm1371_vm5, %v1643_v11, -1e+30 }
 0xcc0   :  { %v1649_v12 = vsel %vm133_vm1, %v1646_v14, -inf }
 0xcc1   :  { %v1626_v46 = vpop.permute.xlu0 %1625  ;;  %1650 = vmax.xlane.f32.xlu1 %v1649_v12 }
 0xcc2   :  { %v1635_v15 = vadd.f32 %v1633_v62, %v1626_v46  ;;  %v1730_v18 = vpop.permute.xlu1 %1729 }
 0xcc3   :  { %v1738_v19 = vadd.f32 %v1736_v48, %v1730_v18 }
 0xcc4   :  { %v1641_v20 = vmul.f32 0.2, %v1635_v15  ;;  %vm1638_vm11 = vcmp.gt.f32.partialorder %v1635_v15, 0.0 }
 0xcc5   :  { %v1744_v23 = vmul.f32 0.2, %v1738_v19  ;;  %vm1741_vm12 = vcmp.gt.f32.partialorder %v1738_v19, 0.0 }
 0xcc6   :  { %v1644_v17 = vsel %vm1638_vm11, %v1635_v15, %v1641_v20 }
 0xcc7   :  { %v1647_v40 = vsel %vm1372_vm10, %v1644_v17, -1e+30  ;;  %v1747_v29 = vsel %vm1741_vm12, %v1738_v19, %v1744_v23 }
 0xcc8   :  { %v1652_v27 = vsel %vm133_vm1, %v1647_v40, -inf  ;;  %v1750_v31 = vsel %vm1372_vm10, %v1747_v29, -1e+30 }
 0xcc9   :  { %1653 = vmax.xlane.f32.xlu0 %v1652_v27  ;;  %v1755_v50 = vsel %vm133_vm1, %v1750_v31, -inf }
 0xcca   :  { %v1734_v10 = vpop.permute.xlu0 %1733  ;;  %1756 = vmax.xlane.f32.xlu1 %v1755_v50 }
 0xccb   :  { %v1739_v16 = vadd.f32 %v1736_v48, %v1734_v10 }
 0xccd   :  { %v1745_v9 = vmul.f32 0.2, %v1739_v16  ;;  %vm1742_vm13 = vcmp.gt.f32.partialorder %v1739_v16, 0.0 }
 0xccf   :  { %v1748_v22 = vsel %vm1742_vm13, %v1739_v16, %v1745_v9 }
 0xcd0   :  { %v1751_v33 = vsel %vm1373_vm7, %v1748_v22, -1e+30 }
 0xcd1   :  { %v1758_v24 = vsel %vm133_vm1, %v1751_v33, -inf }
 0xcd2   :  { %1759 = vmax.xlane.f32.xlu1 %v1758_v24 }
 0xd1c   :  { %v1754_v13 = vpop.xlane.xlu2 %1753 }
 0xd1d   :  { %v1761_v28 = vsub.f32 %v1749_v57, %v1754_v13 }
 0xd1f   :  { %v1764_v35 = vmul.f32 1.442695, %v1761_v28 }
 0xd21   :  { %2395 = vpow2.f32 %v1764_v35 }
 0xd27   :  { %v2396_v39 = vpop.eup %2395 }
 0xd28   :  { %v3402_v54 = vsel %vm1371_vm5, %v2396_v39, 0.0 }
 0xd29   :  { %v1773_v41 = vsel %vm133_vm1, %v3402_v54, 0.0 }
 0xd2a   :  { %1774 = vadd.xlane.f32.xlu0 %v1773_v41 }
 0xd2c   :  { %v1657_v52 = vpop.xlane.xlu2 %1656 }
 0xd2d   :  { %v1660_v48 = vsub.f32 %v1648_v59, %v1657_v52 }
 0xd2f   :  { %v1665_v58 = vmul.f32 1.442695, %v1660_v48 }
 0xd34   :  { %v1651_v63 = vpop.xlane.xlu1 %1650 }
 0xd35   :  { %v1658_v45 = vsub.f32 %v1646_v14, %v1651_v63 }
 0xd37   :  { %v1661_v53 = vmul.f32 1.442695, %v1658_v45 }
 0xd39   :  { %2397 = vpow2.f32 %v1661_v53 }
 0xd3c   :  { %v1654_v47 = vpop.xlane.xlu0 %1653 }
 0xd3d   :  { %v1659_v49 = vsub.f32 %v1647_v40, %v1654_v47  ;;  %v1757_v60 = vpop.xlane.xlu1 %1756 }
 0xd3e   :  { %v1762_v25 = vsub.f32 %v1750_v31, %v1757_v60  ;;  %2343 = vrot.lane.b32.xlu0 %v2342_v56, %s2423_s11 }
 0xd3f   :  { %v2398_v55 = vpop.eup %2397  ;;  %v1663_v57 = vmul.f32 1.442695, %v1659_v49 }
 0xd40   :  { %v1766_v21 = vmul.f32 1.442695, %v1762_v25  ;;  %v3411_v62 = vsel %vm1371_vm5, %v2398_v55, 0.0 }
 0xd41   :  { %2399 = vpow2.f32 %v1663_v57  ;;  %v1670_v5 = vsel %vm133_vm1, %v3411_v62, 0.0 }
 0xd42   :  { %2401 = vpow2.f32 %v1766_v21  ;;  %1671 = vadd.xlane.f32.xlu2 %v1670_v5 }
 0xd43   :  { %2403 = vpow2.f32 %v1665_v58 }
 0xd45   :  { %v1760_v43 = vpop.xlane.xlu1 %1759 }
 0xd46   :  { %v1763_v44 = vsub.f32 %v1751_v33, %v1760_v43 }
 0xd47   :  { %v2400_v36 = vpop.eup %2399 }
 0xd48   :  { %v2402_v51 = vpop.eup %2401  ;;  %v1768_v59 = vmul.f32 1.442695, %v1763_v44  ;;  %v3417_v61 = vsel %vm1372_vm10, %v2400_v36, 0.0 }
 0xd49   :  { %v1673_v2 = vsel %vm133_vm1, %v3417_v61, 0.0  ;;  %v3423_v3 = vsel %vm1372_vm10, %v2402_v51, 0.0  ;;  %v2404_v11 = vpop.eup %2403 }
 0xd4a   :  { %2405 = vpow2.f32 %v1768_v59  ;;  %1674 = vadd.xlane.f32.xlu1 %v1673_v2  ;;  %v1776_v7 = vsel %vm133_vm1, %v3423_v3, 0.0  ;;  %v3429_v14 = vsel %vm1373_vm7, %v2404_v11, 0.0 }
 0xd4b   :  { %1777 = vadd.xlane.f32.xlu2 %v1776_v7  ;;  %v1676_v46 = vsel %vm133_vm1, %v3429_v14, 0.0 }
 0xd50   :  { %v2406_v12 = vpop.eup %2405 }
 0xd51   :  { %v3435_v15 = vsel %vm1373_vm7, %v2406_v12, 0.0 }
 0xd52   :  { %1677 = vadd.xlane.f32.xlu1 %v1676_v46  ;;  %v1779_v18 = vsel %vm133_vm1, %v3435_v15, 0.0 }
 0xd53   :  { %1780 = vadd.xlane.f32.xlu2 %v1779_v18 }
 0xd6b   :  { %1827 = vrot.lane.b32.xlu1 %v3351_v42, %s2423_s11 }
 0xd9d   :  { %v3441_v19 = vpop.xlane.xlu0 %1774 }
 0xd9e   :  { %v1793_v18 = vand.u32 2147483648, %v3441_v19  ;;  %vm1787_vm13 = vweird.f32 %v3441_v19 }
 0xdb0   :  { %v2344_v20 = vpop.permute.xlu0 %2343 }
 0xdb1   :  { %v2345_v23 = vunpack.i.l.bf16 %v2344_v20  ;;  %v2346_v17 = vunpack.i.h.bf16 %v2344_v20 }
 0xdb3   :  { %1858 = vmatpush.msrb.mxu3 %v2345_v23 }
 0xdb5   :  { %1859 = vmatpush.msrb.mxu3 %v2346_v17  ;;  %v1672_v40 = vpop.xlane.xlu2 %1671 }
 0xdb6   :  { %2407 = vrcp.f32 %v1672_v40  ;;  %v1690_v10 = vand.u32 2147483648, %v1672_v40  ;;  %v1688_v42 = vand.u32 2147483647, %v1672_v40  ;;  %vm1684_vm15 = vweird.f32 %v1672_v40 }
 0xdb7   :  { %2409 = vrcp.f32 %v3441_v19 }
 0xdb8   :  { %v1691_v13 = vor.u32 1.1754944e-38, %v1690_v10  ;;  %vm1689_vm4 = vcmp.eq.f32.partialorder %v1688_v42, 8.507059e+37 }
 0xdbc   :  { %v2408_v29 = vpop.eup %2407 }
 0xdbd   :  { %v1680_v27 = vmul.f32 %v2408_v29, %v1672_v40  ;;  %v1675_v31 = vpop.xlane.xlu1 %1674  ;;  %vm1685_vm14 = vweird.f32 %v2408_v29  ;;  %v3446_v22 = vpop.eup %2409 }
 0xdbe   :  { %2411 = vrcp.f32 %v1675_v31  ;;  %v3444_v9 = vpop.xlane.xlu2 %1777  ;;  %vm1686_vm3 = vmor %vm1684_vm15, %vm1685_vm14  ;;  %v1783_v63 = vmul.f32 %v3446_v22, %v3441_v19  ;;  %v1704_v53 = vand.u32 2147483648, %v1675_v31  ;;  %v1702_v56 = vand.u32 2147483647, %v1675_v31 }
 0xdbf   :  { %v1681_v50 = vsub.f32 1.0, %v1680_v27  ;;  %2413 = vrcp.f32 %v3444_v9  ;;  %vm1698_vm6 = vweird.f32 %v1675_v31  ;;  %vm1788_vm10 = vweird.f32 %v3446_v22 }
 0xdc0   :  { %v1784_v49 = vsub.f32 1.0, %v1783_v63  ;;  %v1705_v57 = vor.u32 1.1754944e-38, %v1704_v53  ;;  %vm1703_vm8 = vcmp.eq.f32.partialorder %v1702_v56, 8.507059e+37  ;;  %vm1789_vm15 = vmor %vm1787_vm13, %vm1788_vm10 }
 0xdc1   :  { %v1682_v16 = vmul.f32 %v2408_v29, %v1681_v50  ;;  %v1794_v50 = vor.u32 1.1754944e-38, %v1793_v18 }
 0xdc2   :  { %v1785_v5 = vmul.f32 %v3446_v22, %v1784_v49  ;;  %v1909_v49 = vperm.slane %v3195_v26, 2 }
 0xdc3   :  { %v1683_v33 = vadd.f32 %v2408_v29, %v1682_v16 }
 0xdc4   :  { %v2412_v24 = vpop.eup %2411  ;;  %v1786_v7 = vadd.f32 %v3446_v22, %v1785_v5 }
 0xdc5   :  { %v1687_v28 = vsel %vm1686_vm3, %v2408_v29, %v1683_v33  ;;  %v1694_v35 = vmul.f32 %v2412_v24, %v1675_v31  ;;  %v1678_v39 = vpop.xlane.xlu1 %1677  ;;  %vm1699_vm5 = vweird.f32 %v2412_v24  ;;  %v2414_v48 = vpop.eup %2413 }
 0xdc6   :  { %v1692_v41 = vsel %vm1689_vm4, %v1691_v13, %v1687_v28  ;;  %2415 = vrcp.f32 %v1678_v39  ;;  %v3453_v60 = vpop.xlane.xlu2 %1780  ;;  %vm1700_vm7 = vmor %vm1698_vm6, %vm1699_vm5  ;;  %v1797_v43 = vmul.f32 %v2414_v48, %v3444_v9  ;;  %v1718_v51 = vand.u32 2147483648, %v1678_v39 }
 0xdc7   :  { %v1695_v45 = vsub.f32 1.0, %v1694_v35  ;;  %v1721_v52 = vmul.f32 %v1692_v41, %v3411_v62  ;;  %2417 = vrcp.f32 %v3453_v60  ;;  %v1716_v2 = vand.u32 2147483647, %v1678_v39 }
 0xdc8   :  { %v1798_v11 = vsub.f32 1.0, %v1797_v43  ;;  %vm1712_vm11 = vweird.f32 %v1678_v39  ;;  %v1719_v20 = vor.u32 1.1754944e-38, %v1718_v51  ;;  %v1790_v40 = vsel %vm1789_vm15, %v3446_v22, %v1786_v7 }
 0xdc9   :  { %v1696_v47 = vmul.f32 %v2412_v24, %v1695_v45  ;;  %2297 = vmatmul.msk.f32.vlgmr.msra.gmra.mxu2 %vm133_vm1, %v1721_v52  ;;  %vm1717_vm14 = vcmp.eq.f32.partialorder %v1716_v2, 8.507059e+37  ;;  %vm1802_vm4 = vweird.f32 %v2414_v48  ;;  %vm1801_vm5 = vweird.f32 %v3444_v9 }
 0xdca   :  { %v1799_v29 = vmul.f32 %v2414_v48, %v1798_v11  ;;  %vm1803_vm6 = vmor %vm1801_vm5, %vm1802_vm4  ;;  %v1821_v41 = vand.u32 2147483648, %v3453_v60 }
 0xdcb   :  { %v1697_v25 = vadd.f32 %v2412_v24, %v1696_v47 }
 0xdcc   :  { %v2416_v55 = vpop.eup %2415  ;;  %v1800_v42 = vadd.f32 %v2414_v48, %v1799_v29  ;;  %v1822_v45 = vor.u32 1.1754944e-38, %v1821_v41 }
 0xdcd   :  { %v1708_v21 = vmul.f32 %v2416_v55, %v1678_v39  ;;  %v1701_v58 = vsel %vm1700_vm7, %v2412_v24, %v1697_v25  ;;  %vm1713_vm9 = vweird.f32 %v2416_v55  ;;  %v2418_v46 = vpop.eup %2417  ;;  %v1805_v24 = vand.u32 2147483647, %v3444_v9 }
 0xdce   :  { %v1706_v62 = vsel %vm1703_vm8, %v1705_v57, %v1701_v58  ;;  %vm1714_vm12 = vmor %vm1712_vm11, %vm1713_vm9  ;;  %v1811_v27 = vmul.f32 %v2418_v46, %v3453_v60  ;;  %v1804_v13 = vsel %vm1803_vm6, %v2414_v48, %v1800_v42  ;;  %vm1816_vm8 = vweird.f32 %v2418_v46 }
 0xdcf   :  { %v1709_v44 = vsub.f32 1.0, %v1708_v21  ;;  %v1722_v36 = vmul.f32 %v1706_v62, %v3417_v61  ;;  %v1791_v61 = vand.u32 2147483647, %v3441_v19  ;;  %v1807_v19 = vand.u32 2147483648, %v3444_v9 }
 0xdd0   :  { %v1812_v16 = vsub.f32 1.0, %v1811_v27  ;;  %vm1806_vm7 = vcmp.eq.f32.partialorder %v1805_v24, 8.507059e+37  ;;  %vm1815_vm9 = vweird.f32 %v3453_v60  ;;  %v2260_v24 = vld [vmem:[%s3550_s2 + $0x3c0] sm:$0xff] }
 0xdd1   :  { %v1710_v59 = vmul.f32 %v2416_v55, %v1709_v44  ;;  %2298 = vmatmul.msk.f32.gmra.mxu2 %vm133_vm1, %v1722_v36  ;;  %vm1792_vm3 = vcmp.eq.f32.partialorder %v1791_v61, 8.507059e+37  ;;  %v1808_v28 = vor.u32 1.1754944e-38, %v1807_v19  ;;  %vm1817_vm10 = vmor %vm1815_vm9, %vm1816_vm8  ;;  %v2262_v61 = vld [vmem:[%s3550_s2 + $0x3d0] sm:$0xff] }
 0xdd2   :  { %v1795_v10 = vsel %vm1792_vm3, %v1794_v50, %v1790_v40  ;;  %v2261_v40 = vld [vmem:[%s3550_s2 + $0x3c8] sm:$0xff] }
 0xdd3   :  { %v1711_v12 = vadd.f32 %v2416_v55, %v1710_v59  ;;  %v1824_v22 = vmul.f32 %v1795_v10, %v3402_v54  ;;  %v1809_v35 = vsel %vm1806_vm7, %v1808_v28, %v1804_v13  ;;  %v1819_v54 = vand.u32 2147483647, %v3453_v60 }
 0xdd4   :  { %v1825_v63 = vmul.f32 %v1809_v35, %v3423_v3 }
 0xdd5   :  { %v1715_v23 = vsel %vm1714_vm12, %v2416_v55, %v1711_v12  ;;  %vm1820_vm11 = vcmp.eq.f32.partialorder %v1819_v54, 8.507059e+37 }
 0xdd6   :  { %v1720_v17 = vsel %vm1717_vm14, %v1719_v20, %v1715_v23  ;;  %v2265_v20 = vld [vmem:[%s3550_s2 + $0x3e8] sm:$0xff] }
 0xdd7   :  { %v1723_v31 = vmul.f32 %v1720_v17, %v3429_v14  ;;  %v1813_v14 = vmul.f32 %v2418_v46, %v1812_v16 }
 0xdd9   :  { %2299 = vmatmul.msk.f32.gmra.mxu2 %vm133_vm1, %v1723_v31  ;;  %v1814_v39 = vadd.f32 %v2418_v46, %v1813_v14 }
 0xddb   :  { %v1818_v9 = vsel %vm1817_vm10, %v2418_v46, %v1814_v39 }
 0xddc   :  { %v1823_v53 = vsel %vm1820_vm11, %v1822_v45, %v1818_v9 }
 0xddd   :  { %v1828_v33 = vpop.permute.xlu1 %1827  ;;  %v1826_v52 = vmul.f32 %v1823_v53, %v3435_v15 }
 0xdde   :  { %1860 = vmatpush.msrb.mxu3 %v1828_v33 }
 0xddf   :  { %2294 = vmatmul.msk.f32.vlgmr.msrb.gmra.mxu3 %vm133_vm1, %v1824_v22 }
 0xde7   :  { %2295 = vmatmul.msk.f32.gmra.mxu3 %vm133_vm1, %v1825_v63  ;;  %v2002_v63 = vperm.slane %v3195_v26, 4 }
 0xdef   :  { %2296 = vmatmul.msk.f32.gmra.mxu3 %vm133_vm1, %v1826_v52 }
 0xe4c   :  { %v1897_v47 = vpop.f32.mrf.mxu2 }
 0xe54   :  { %v1900_v55 = vpop.f32.mrf.mxu2 }
 0xe5c   :  { %v1903_v43 = vpop.f32.mrf.mxu2 }
 0xe62   :  { %v1862_v56 = vpop.f32.mrf.mxu3 }
 0xe63   :  { %v1898_v48 = vadd.f32 %v1897_v47, %v1862_v56 }
 0xe65   :  { %v1906_v25 = vmul.f32 0.5, %v1898_v48 }
 0xe67   :  { %v1910_v3 = vadd.f32 %v1909_v49, %v1906_v25 }
 0xe69   :  { %v1913_v60 = vadd.f32 %v1910_v3, %v3308_v30 }
 0xe6a   :  { %v1865_v57 = vpop.f32.mrf.mxu3 }
 0xe6b   :  { %v1916_v21 = vmax.f32 %v1913_v60, 0.0  ;;  %v1901_v58 = vadd.f32 %v1900_v55, %v1865_v57 }
 0xe6d   :  { %v1907_v62 = vmul.f32 0.5, %v1901_v58  ;;  %2300 = vmatmul.msk.f32.vlgmr.msra.gmra.mxu0 %vm96_vm0, %v1916_v21 }
 0xe6f   :  { %v1911_v5 = vadd.f32 %v1909_v49, %v1907_v62 }
 0xe71   :  { %v1914_v15 = vadd.f32 %v1911_v5, %v3314_v4 }
 0xe72   :  { %v1868_v44 = vpop.f32.mrf.mxu3 }
 0xe73   :  { %v1904_v36 = vadd.f32 %v1903_v43, %v1868_v44  ;;  %v1917_v51 = vmax.f32 %v1914_v15, 0.0 }
 0xe75   :  { %v1908_v59 = vmul.f32 0.5, %v1904_v36  ;;  %2301 = vmatmul.msk.f32.gmra.mxu0 %vm96_vm0, %v1917_v51 }
 0xe77   :  { %v1912_v2 = vadd.f32 %v1909_v49, %v1908_v59 }
 0xe79   :  { %v1915_v7 = vadd.f32 %v1912_v2, %v3319_v32 }
 0xe7b   :  { %v1918_v11 = vmax.f32 %v1915_v7, 0.0 }
 0xe7d   :  { %2302 = vmatmul.msk.f32.gmra.mxu0 %vm96_vm0, %v1918_v11 }
 0xe85   :  { %2313 = vmatmul.msk.f32.vlgmr.msrb.gmra.mxu0 %vm96_vm0, %v2975_v8  ;;  %v2267_v8 = vld [vmem:[%s3550_s2 + $0x3f8] sm:$0xff] }
 0xe86   :  { %2020 = vmatpush.msra.mxu3 %v2267_v8 }
 0xe8d   :  { %2314 = vmatmul.msk.f32.gmra.mxu0 %vm96_vm0, %v3304_v37  ;;  %v2266_v37 = vld [vmem:[%s3550_s2 + $0x3f0] sm:$0xff] }
 0xe8e   :  { %2021 = vmatpush.msra.mxu3 %v2266_v37 }
 0xe90   :  { %2022 = vmatpush.msra.mxu3 %v2265_v20 }
 0xeea   :  { %v1945_v12 = vpop.f32.mrf.mxu0 }
 0xef2   :  { %v1948_v46 = vpop.f32.mrf.mxu0 }
 0xefa   :  { %v1951_v18 = vpop.f32.mrf.mxu0 }
 0xefb   :  { %1968 = vmatpush.msrb.mxu1 %v1951_v18 }
 0xefd   :  { %1969 = vmatpush.msrb.mxu1 %v1948_v46 }
 0xeff   :  { %1970 = vmatpush.msrb.mxu1 %v1945_v12 }
 0xf00   :  { %2303 = vmatmul.msk.f32.vlgmr.msrb.gmra.mxu1 %vm133_vm1, %v3220_v38  ;;  %v2264_v38 = vld [vmem:[%s3550_s2 + $0x3e0] sm:$0xff] }
 0xf01   :  { %2023 = vmatpush.msra.mxu3 %v2264_v38 }
 0xf08   :  { %2304 = vmatmul.msk.f32.gmra.mxu1 %vm133_vm1, %v3227_v6  ;;  %v1954_v6 = vperm.slane %v3195_v26, 3  ;;  %v2098_v26 = vpop.f32.mrf.mxu0 }
 0xf10   :  { %2305 = vmatmul.msk.f32.gmra.mxu1 %vm133_vm1, %v3234_v34  ;;  %v2263_v34 = vld [vmem:[%s3550_s2 + $0x3d8] sm:$0xff]  ;;  %vm2104_vm1 = vcmask 64512   ;;  %v2101_v48 = vpop.f32.mrf.mxu0 }
 0xf11   :  { %2024 = vmatpush.msra.mxu3 %v2263_v34 }
 0xf13   :  { %2025 = vmatpush.msra.mxu3 %v2262_v61 }
 0xf15   :  { %2026 = vmatpush.msra.mxu3 %v2261_v40 }
 0xf17   :  { %2027 = vmatpush.msra.mxu3 %v2260_v24 }
 0xf7d   :  { %v1972_v23 = vpop.f32.mrf.mxu1 }
 0xf7e   :  { %v1973_v17 = vadd.f32 %v1972_v23, %v1954_v6 }
 0xf80   :  { %v1981_v29 = vadd.f32 %v1973_v17, %v1916_v21 }
 0xf82   :  { %v1984_v27 = vmax.f32 %v1981_v29, 0.0 }
 0xf84   :  { %1990 = vrot.lane.b32.xlu2 %v1984_v27, %s2424_s22 }
 0xf85   :  { %v1975_v31 = vpop.f32.mrf.mxu1 }
 0xf86   :  { %v1976_v50 = vadd.f32 %v1975_v31, %v1954_v6 }
 0xf88   :  { %v1982_v10 = vadd.f32 %v1976_v50, %v1917_v51 }
 0xf8a   :  { %v1985_v16 = vmax.f32 %v1982_v10, 0.0 }
 0xf8c   :  { %1992 = vrot.lane.b32.xlu0 %v1985_v16, %s2424_s22 }
 0xf8d   :  { %v1978_v42 = vpop.f32.mrf.mxu1 }
 0xf8e   :  { %v1979_v19 = vadd.f32 %v1978_v42, %v1954_v6 }
 0xf90   :  { %v1983_v33 = vadd.f32 %v1979_v19, %v1918_v11 }
 0xf92   :  { %v1986_v22 = vmax.f32 %v1983_v33, 0.0 }
 0xf94   :  { %1994 = vrot.lane.b32.xlu0 %v1986_v22, %s2424_s22 }
 0xfde   :  { %v1991_v14 = vpop.permute.xlu2 %1990 }
 0xfdf   :  { %v1999_v13 = vsel %vm96_vm0, %v3308_v30, %v1991_v14  ;;  %v2420_v30 = vld [vmem:[%s3550_s2 + $0x2d8] sm:$0x1f] }
 0xfe0   :  { %2306 = vmatmul.msk.f32.vlgmr.msra.gmra.mxu3 %vm210_vm2, %v1999_v13  ;;  %v1328_v54 = vperm.slane %v2420_v30, 4 }
 0xfe2   :  { %v1359_v53 = vadd.f32 %v3349_v1, %v1328_v54 }
 0xffe   :  { %v1993_v28 = vpop.permute.xlu0 %1992 }
 0xfff   :  { %v2000_v35 = vsel %vm96_vm0, %v3314_v4, %v1993_v28  ;;  %v1356_v4 = vadd.f32 %v3347_v0, %v1328_v54 }
0x1000   :  { %2307 = vmatmul.msk.f32.gmra.mxu3 %vm210_vm2, %v2000_v35 }
0x1006   :  { %v1995_v39 = vpop.permute.xlu0 %1994 }
0x1007   :  { %v2001_v41 = vsel %vm96_vm0, %v3319_v32, %v1995_v39 }
0x1008   :  { %2308 = vmatmul.msk.f32.gmra.mxu3 %vm210_vm2, %v2001_v41  ;;  %vm2106_vm2 = vcmask 60416  }
0x1063   :  { %v2029_v9 = vpop.f32.mrf.mxu3 }
0x1064   :  { %v2030_v45 = vadd.f32 %v2029_v9, %v2002_v63 }
0x1066   :  { %2309 = vmatpush.xpose.msk.msrb.mxu2 %vm96_vm0, %v2030_v45 }
0x1069   :  { %2310 = vmatmul.msk.f32.vlgmr.msrb.gmra.mxu2 %vm96_vm0, %v1356_v4 }
0x1071   :  { %2311 = vmatmul.msk.f32.gmra.mxu2 %vm96_vm0, %v1359_v53 }
0x1083   :  { %v2032_v32 = vpop.f32.mrf.mxu3 }
0x108b   :  { %v2034_v52 = vpop.f32.mrf.mxu3 }
0x10ec   :  { %v2062_v47 = vpop.f32.mrf.mxu2 }
0x10ed   :  { %v2099_v56 = vadd.f32 %v2098_v26, %v2062_v47 }
0x10ef   :  { %2105 = vst.msk [vmem:[%s3553_s3] sm:$0xff] %vm2104_vm1, %v2099_v56 }
0x10f4   :  { %v2065_v49 = vpop.f32.mrf.mxu2 }
0x10f5   :  { %v2102_v0 = vadd.f32 %v2101_v48, %v2065_v49 }
0x10f7   :  { %2107 = vst.msk [vmem:[%s3553_s3 + $0x8] sm:$0xf] %vm2106_vm2, %v2102_v0 }

</bundles_post_ra>
